<compile_context>
chip_gen: v7x
topology: tpu7x:2x2x1
jax: 0.10.0
libtpu: 0.0.40
codegen_flags: <defaults>
</compile_context>

<pallas_src>
import functools

import jax
import jax.numpy as jnp
from jax.experimental import pallas as pl
from jax.experimental.pallas import tpu as pltpu

IN_FEATURES = 2 * 28 * 28      # 1568 — used at its natural width (full-dim block)
HIDDEN = 512
OUT_FEATURES = 19
OUT_FEATURES_PAD = 128         # lane-dense output -> unmasked full-lane stores


def _round_up(x, m):
    return ((x + m - 1) // m) * m


def _choose_tile_b(batch):
    """Static (trace-time) batch tile choice.

    Cap at 512 rows (amortizes the ~0.35us grid-step overhead, stays well
    inside scoped VMEM on v5e/v6e/v7x) and make sure the grid has >= 2 steps
    whenever the batch allows it so both v7x TensorCores get work.
    """
    b8 = _round_up(batch, 8)
    tile = min(512, b8)
    if b8 // tile < 2 and b8 >= 16:
        tile = _round_up((b8 + 1) // 2, 8)
    return tile


def _mlp_kernel(x_ref, w1_ref, b1_ref, w2_ref, b2_ref, w3_ref, b3_ref, o_ref):
    # x: (TB, 1568) f32 (cast to bf16 here, on-chip); w1: (1568, 512) bf16;
    # w2: (512, 512) bf16; w3: (512, 128) bf16; biases f32.
    # All matmuls accumulate in f32 on the MXU; biases added in f32.
    x = x_ref[...].astype(jnp.bfloat16)
    h1 = jnp.dot(x, w1_ref[...], preferred_element_type=jnp.float32) + b1_ref[...]
    h1 = jnp.maximum(h1, 0.0).astype(jnp.bfloat16)
    h2 = jnp.dot(h1, w2_ref[...], preferred_element_type=jnp.float32) + b2_ref[...]
    h2 = jnp.maximum(h2, 0.0).astype(jnp.bfloat16)
    o_ref[...] = (jnp.dot(h2, w3_ref[...], preferred_element_type=jnp.float32)
                  + b3_ref[...]).astype(o_ref.dtype)


def pack_params(params):
    """One-time packing: bf16 weights, f32 (1, N) biases, w3/b3 padded to 128 lanes.

    Call this once (outside the per-step forward); the packed tuple is what
    net_nn_extra_forward consumes.
    """
    w1, b1, w2, b2, w3, b3 = params
    w1p = jnp.asarray(w1, jnp.float32).astype(jnp.bfloat16)                 # (1568, 512)
    w2p = jnp.asarray(w2, jnp.float32).astype(jnp.bfloat16)                 # (512, 512)
    w3p = jnp.pad(jnp.asarray(w3, jnp.float32),
                  ((0, 0), (0, OUT_FEATURES_PAD - OUT_FEATURES))).astype(jnp.bfloat16)
    b1p = jnp.asarray(b1, jnp.float32).reshape(1, HIDDEN)
    b2p = jnp.asarray(b2, jnp.float32).reshape(1, HIDDEN)
    b3p = jnp.pad(jnp.asarray(b3, jnp.float32).reshape(1, OUT_FEATURES),
                  ((0, 0), (0, OUT_FEATURES_PAD - OUT_FEATURES)))
    return (w1p, b1p, w2p, b2p, w3p, b3p)


@functools.partial(jax.jit, static_argnames=("tile_b",))
def net_nn_extra_forward(x, packed_params, tile_b=None):
    """x: (B, 2, 28, 28) float32 NCHW.  packed_params from pack_params().
    Returns logits (B, 19) float32."""
    w1p, b1p, w2p, b2p, w3p, b3p = packed_params
    B = x.shape[0]
    x_flat = x.reshape(B, -1).astype(jnp.float32)     # nn.Flatten; reshape is free
    assert x_flat.shape[1] == IN_FEATURES

    if tile_b is None:
        tile_b = _choose_tile_b(B)

    B_pad = _round_up(B, tile_b)
    if B_pad != B:
        # Rows-only pad (no cast, no K pad); skipped entirely when B divides.
        x_flat = jnp.pad(x_flat, ((0, B_pad - B), (0, 0)))

    grid = (B_pad // tile_b,)

    weight_bytes = (IN_FEATURES * HIDDEN + HIDDEN * HIDDEN + HIDDEN * OUT_FEATURES_PAD) * 2
    bias_bytes = (HIDDEN + HIDDEN + OUT_FEATURES_PAD) * 4
    cost = pl.CostEstimate(
        flops=2 * B_pad * (IN_FEATURES * HIDDEN + HIDDEN * HIDDEN + HIDDEN * OUT_FEATURES_PAD),
        transcendentals=0,
        bytes_accessed=(B_pad * IN_FEATURES * 4          # x (f32, read once)
                        + weight_bytes + bias_bytes      # resident weights/biases
                        + B_pad * OUT_FEATURES_PAD * 4), # output slab
    )

    out = pl.pallas_call(
        _mlp_kernel,
        out_shape=jax.ShapeDtypeStruct((B_pad, OUT_FEATURES_PAD), jnp.float32),
        grid_spec=pltpu.PrefetchScalarGridSpec(
            num_scalar_prefetch=0,
            grid=grid,
            in_specs=[
                # x tile: full-K block (1568 == full array dim, legal without 128-pad)
                pl.BlockSpec((tile_b, IN_FEATURES), lambda i: (i, 0)),
                # weights/biases: constant index_map -> fetched once, resident in VMEM
                pl.BlockSpec((IN_FEATURES, HIDDEN), lambda i: (0, 0)),        # w1
                pl.BlockSpec((1, HIDDEN), lambda i: (0, 0)),                  # b1
                pl.BlockSpec((HIDDEN, HIDDEN), lambda i: (0, 0)),             # w2
                pl.BlockSpec((1, HIDDEN), lambda i: (0, 0)),                  # b2
                pl.BlockSpec((HIDDEN, OUT_FEATURES_PAD), lambda i: (0, 0)),   # w3
                pl.BlockSpec((1, OUT_FEATURES_PAD), lambda i: (0, 0)),        # b3
            ],
            out_specs=pl.BlockSpec((tile_b, OUT_FEATURES_PAD), lambda i: (i, 0)),
        ),
        compiler_params=pltpu.CompilerParams(
            dimension_semantics=("parallel",),   # batch axis shards across TCs on v7x
        ),
        cost_estimate=cost,
    )(x_flat, w1p, b1p, w2p, b2p, w3p, b3p)

    return out[:B, :OUT_FEATURES]


def init_params(key):
    """Deterministic init mimicking PyTorch Linear's U(-1/sqrt(in), 1/sqrt(in)).
    Weights stored as (in, out) so the kernel computes x @ W + b directly."""
    ks = jax.random.split(key, 6)

    def linear(kw, kb, fan_in, fan_out):
        bound = 1.0 / jnp.sqrt(fan_in)
        w = jax.random.uniform(kw, (fan_in, fan_out), jnp.float32, -bound, bound)
        b = jax.random.uniform(kb, (fan_out,), jnp.float32, -bound, bound)
        return w, b

    w1, b1 = linear(ks[0], ks[1], IN_FEATURES, HIDDEN)
    w2, b2 = linear(ks[2], ks[3], HIDDEN, HIDDEN)
    w3, b3 = linear(ks[4], ks[5], HIDDEN, OUT_FEATURES)
    return (w1, b1, w2, b2, w3, b3)


def reference_forward_f32(x, params):
    w1, b1, w2, b2, w3, b3 = params
    xf = x.reshape(x.shape[0], -1)
    h1 = jnp.maximum(xf @ w1 + b1, 0.0)
    h2 = jnp.maximum(h1 @ w2 + b2, 0.0)
    return h2 @ w3 + b3


def reference_forward_bf16(x, params):
    """Same bf16-input / f32-accumulate recipe as the kernel, in plain JAX."""
    w1, b1, w2, b2, w3, b3 = params
    xf = x.reshape(x.shape[0], -1).astype(jnp.bfloat16)
    h1 = jnp.dot(xf, w1.astype(jnp.bfloat16), preferred_element_type=jnp.float32) + b1
    h1 = jnp.maximum(h1, 0.0).astype(jnp.bfloat16)
    h2 = jnp.dot(h1, w2.astype(jnp.bfloat16), preferred_element_type=jnp.float32) + b2
    h2 = jnp.maximum(h2, 0.0).astype(jnp.bfloat16)
    return jnp.dot(h2, w3.astype(jnp.bfloat16), preferred_element_type=jnp.float32) + b3


if __name__ == "__main__":
    key = jax.random.PRNGKey(0)
    k_params, k_x1, k_x2 = jax.random.split(key, 3)

    params = init_params(k_params)
    packed = pack_params(params)     # one-time weight packing (bf16 + lane pad)

    # Case 1: tiny batch (single grid step, batch padded inside the wrapper).
    x1 = jax.random.normal(k_x1, (4, 2, 28, 28), jnp.float32)
    out1 = jax.block_until_ready(net_nn_extra_forward(x1, packed))
    assert out1.shape == (4, OUT_FEATURES)
    assert jnp.allclose(out1, reference_forward_bf16(x1, params), atol=1e-2, rtol=1e-2)
    assert jnp.allclose(out1, reference_forward_f32(x1, params), atol=1e-1, rtol=1e-1)

    # Case 2: ragged batch exercising the multi-step grid + row-pad path.
    x2 = jax.random.normal(k_x2, (20, 2, 28, 28), jnp.float32)
    out2 = jax.block_until_ready(net_nn_extra_forward(x2, packed))
    assert out2.shape == (20, OUT_FEATURES)
    assert jnp.allclose(out2, reference_forward_bf16(x2, params), atol=1e-2, rtol=1e-2)
    assert jnp.allclose(out2, reference_forward_f32(x2, params), atol=1e-1, rtol=1e-1)

    print("KERNEL_OK")
</pallas_src>

<mosaic_0001>
module attributes {stable_mosaic.version = 11 : i64} {
  func.func @_mlp_kernel(%arg0: i32, %arg1: memref<8x1568xf32, #tpu.memory_space<vmem>>, %arg2: memref<1568x512xbf16, #tpu.memory_space<vmem>>, %arg3: memref<1x512xf32, #tpu.memory_space<vmem>>, %arg4: memref<512x512xbf16, #tpu.memory_space<vmem>>, %arg5: memref<1x512xf32, #tpu.memory_space<vmem>>, %arg6: memref<512x128xbf16, #tpu.memory_space<vmem>>, %arg7: memref<1x128xf32, #tpu.memory_space<vmem>>, %arg8: memref<8x128xf32, #tpu.memory_space<vmem>>) attributes {dimension_semantics = [#tpu.dimension_semantics<parallel>], iteration_bounds = array<i64: 1>, scalar_prefetch = 0 : i64, scratch_operands = 0 : i64, tpu.core_type = #tpu.core_type<tc>, window_params = [{transform_indices = @transform_0, window_bounds = array<i64: 8, 1568>}, {pipeline_mode = #tpu.pipeline_mode<synchronous>, transform_indices = @transform_1, window_bounds = array<i64: 1568, 512>}, {pipeline_mode = #tpu.pipeline_mode<synchronous>, transform_indices = @transform_2, window_bounds = array<i64: 1, 512>}, {pipeline_mode = #tpu.pipeline_mode<synchronous>, transform_indices = @transform_3, window_bounds = array<i64: 512, 512>}, {pipeline_mode = #tpu.pipeline_mode<synchronous>, transform_indices = @transform_4, window_bounds = array<i64: 1, 512>}, {pipeline_mode = #tpu.pipeline_mode<synchronous>, transform_indices = @transform_5, window_bounds = array<i64: 512, 128>}, {pipeline_mode = #tpu.pipeline_mode<synchronous>, transform_indices = @transform_6, window_bounds = array<i64: 1, 128>}, {transform_indices = @transform_7, window_bounds = array<i64: 8, 128>}]} {
    %c0 = arith.constant 0 : index
    %c0_0 = arith.constant 0 : index
    %0 = vector.load %arg1[%c0, %c0_0] : memref<8x1568xf32, #tpu.memory_space<vmem>>, vector<8x1568xf32>
    %1 = arith.truncf %0 : vector<8x1568xf32> to vector<8x1568xbf16>
    %c0_1 = arith.constant 0 : index
    %c0_2 = arith.constant 0 : index
    %2 = vector.load %arg2[%c0_1, %c0_2] : memref<1568x512xbf16, #tpu.memory_space<vmem>>, vector<1568x512xbf16>
    %cst = arith.constant dense<0.000000e+00> : vector<8x512xf32>
    %3 = tpu.matmul %1, %2, %cst {dimension_numbers = #tpu.dot_dimension_numbers<[1], [0], [0], [1], [0, 0, 1, 1], [], []>} : vector<8x1568xbf16>, vector<1568x512xbf16>, vector<8x512xf32> -> vector<8x512xf32>
    %c0_3 = arith.constant 0 : index
    %c0_4 = arith.constant 0 : index
    %4 = vector.load %arg3[%c0_3, %c0_4] : memref<1x512xf32, #tpu.memory_space<vmem>>, vector<1x512xf32>
    %5 = vector.broadcast %4 : vector<1x512xf32> to vector<8x512xf32>
    %6 = arith.addf %3, %5 : vector<8x512xf32>
    %cst_5 = arith.constant 0.000000e+00 : f32
    %7 = vector.broadcast %cst_5 : f32 to vector<8x512xf32>
    %8 = arith.maximumf %6, %7 : vector<8x512xf32>
    %9 = arith.truncf %8 : vector<8x512xf32> to vector<8x512xbf16>
    %c0_6 = arith.constant 0 : index
    %c0_7 = arith.constant 0 : index
    %10 = vector.load %arg4[%c0_6, %c0_7] : memref<512x512xbf16, #tpu.memory_space<vmem>>, vector<512x512xbf16>
    %cst_8 = arith.constant dense<0.000000e+00> : vector<8x512xf32>
    %11 = tpu.matmul %9, %10, %cst_8 {dimension_numbers = #tpu.dot_dimension_numbers<[1], [0], [0], [1], [0, 0, 1, 1], [], []>} : vector<8x512xbf16>, vector<512x512xbf16>, vector<8x512xf32> -> vector<8x512xf32>
    %c0_9 = arith.constant 0 : index
    %c0_10 = arith.constant 0 : index
    %12 = vector.load %arg5[%c0_9, %c0_10] : memref<1x512xf32, #tpu.memory_space<vmem>>, vector<1x512xf32>
    %13 = vector.broadcast %12 : vector<1x512xf32> to vector<8x512xf32>
    %14 = arith.addf %11, %13 : vector<8x512xf32>
    %cst_11 = arith.constant 0.000000e+00 : f32
    %15 = vector.broadcast %cst_11 : f32 to vector<8x512xf32>
    %16 = arith.maximumf %14, %15 : vector<8x512xf32>
    %17 = arith.truncf %16 : vector<8x512xf32> to vector<8x512xbf16>
    %c0_12 = arith.constant 0 : index
    %c0_13 = arith.constant 0 : index
    %18 = vector.load %arg6[%c0_12, %c0_13] : memref<512x128xbf16, #tpu.memory_space<vmem>>, vector<512x128xbf16>
    %cst_14 = arith.constant dense<0.000000e+00> : vector<8x128xf32>
    %19 = tpu.matmul %17, %18, %cst_14 {dimension_numbers = #tpu.dot_dimension_numbers<[1], [0], [0], [1], [0, 0, 1, 1], [], []>} : vector<8x512xbf16>, vector<512x128xbf16>, vector<8x128xf32> -> vector<8x128xf32>
    %c0_15 = arith.constant 0 : index
    %c0_16 = arith.constant 0 : index
    %20 = vector.load %arg7[%c0_15, %c0_16] : memref<1x128xf32, #tpu.memory_space<vmem>>, vector<1x128xf32>
    %21 = vector.broadcast %20 : vector<1x128xf32> to vector<8x128xf32>
    %22 = arith.addf %19, %21 : vector<8x128xf32>
    %c0_17 = arith.constant 0 : index
    %c0_18 = arith.constant 0 : index
    %23 = vector.load %arg8[%c0_17, %c0_18] : memref<8x128xf32, #tpu.memory_space<vmem>>, vector<8x128xf32>
    tpu.vector_store %arg8[%c0_17, %c0_18], %22 {strides = array<i32>} : memref<8x128xf32, #tpu.memory_space<vmem>>, vector<8x128xf32>,
    return
  }
  func.func @transform_0(%arg0: i32) -> (i32, i32) {
    %c0_i32 = arith.constant 0 : i32
    %c0_i32_0 = arith.constant 0 : i32
    return %arg0, %c0_i32 : i32, i32
  }
  func.func @transform_1(%arg0: i32) -> (i32, i32) {
    %c0_i32 = arith.constant 0 : i32
    %c0_i32_0 = arith.constant 0 : i32
    %c0_i32_1 = arith.constant 0 : i32
    return %c0_i32, %c0_i32_0 : i32, i32
  }
  func.func @transform_2(%arg0: i32) -> (i32, i32) {
    %c0_i32 = arith.constant 0 : i32
    %c0_i32_0 = arith.constant 0 : i32
    %c0_i32_1 = arith.constant 0 : i32
    return %c0_i32, %c0_i32_0 : i32, i32
  }
  func.func @transform_3(%arg0: i32) -> (i32, i32) {
    %c0_i32 = arith.constant 0 : i32
    %c0_i32_0 = arith.constant 0 : i32
    %c0_i32_1 = arith.constant 0 : i32
    return %c0_i32, %c0_i32_0 : i32, i32
  }
  func.func @transform_4(%arg0: i32) -> (i32, i32) {
    %c0_i32 = arith.constant 0 : i32
    %c0_i32_0 = arith.constant 0 : i32
    %c0_i32_1 = arith.constant 0 : i32
    return %c0_i32, %c0_i32_0 : i32, i32
  }
  func.func @transform_5(%arg0: i32) -> (i32, i32) {
    %c0_i32 = arith.constant 0 : i32
    %c0_i32_0 = arith.constant 0 : i32
    %c0_i32_1 = arith.constant 0 : i32
    return %c0_i32, %c0_i32_0 : i32, i32
  }
  func.func @transform_6(%arg0: i32) -> (i32, i32) {
    %c0_i32 = arith.constant 0 : i32
    %c0_i32_0 = arith.constant 0 : i32
    %c0_i32_1 = arith.constant 0 : i32
    return %c0_i32, %c0_i32_0 : i32, i32
  }
  func.func @transform_7(%arg0: i32) -> (i32, i32) {
    %c0_i32 = arith.constant 0 : i32
    %c0_i32_0 = arith.constant 0 : i32
    return %arg0, %c0_i32 : i32, i32
  }
}

</mosaic_0001>

<bundles_post_ra>
// kernel: net_nn_extra_forward.1
= control target key start
LH: loop header
LB: loop body
LE: loop exit
PB: predicated region body
PF: predicated region fallthrough
CT: control target
= control target key end

     0   :  { %12 = vsyncpa [#allocation3], 0  ;;  %s6225_s0 = inlined_call_operand.vmem [shape: f32[8,1568], index: 0, kind: input, shape index: {}]   ;;  %s6226_s1 = inlined_call_operand.hbm [shape: bf16[1568,512], index: 1, kind: input, shape index: {}]   ;;  %s6227_s2 = inlined_call_operand.hbm [shape: f32[1,512], index: 2, kind: input, shape index: {}]   ;;  %s6228_s3 = inlined_call_operand.hbm [shape: bf16[512,512], index: 3, kind: input, shape index: {}]   ;;  %s6229_s4 = inlined_call_operand.hbm [shape: f32[1,512], index: 4, kind: input, shape index: {}]   ;;  %s6230_s5 = inlined_call_operand.hbm [shape: bf16[512,128], index: 5, kind: input, shape index: {}]   ;;  %s6231_s6 = inlined_call_operand.hbm [shape: f32[1,128], index: 6, kind: input, shape index: {}]   ;;  %s6232_s7 = inlined_call_operand.vmem [shape: f32[8,128], index: 7, kind: output, shape index: {}]  }
   0x1   :  { %13 = vsyncpa [#allocation5], 0 }
   0x2   :  { %14 = vsyncpa [#allocation8], 0 }
   0x3   :  { %15 = vsyncpa [#allocation11], 0  ;;  %s6029_s24 = smov [#allocation4]   ;;  %s6030_s26 = smov [#allocation7]  }
   0x4   :  { %s36_s25 = sshll.u32 %s6029_s24, 4  ;;  %s58_s27 = sshll.u32 %s6030_s26, 4  ;;  %s37_s25 = int_to_ptr.vmem [resolvable:$true] %s36_s25  ;;  %s59_s27 = int_to_ptr.vmem [resolvable:$true] %s58_s27 }
   0x5   :  { %s5889_s30 = scalar_lea.hbm %s6227_s2, 64 }
   0x6   :  { %p5890_p0 = scmp.ne.s32.totalorder %s6227_s2, %s5889_s30  ;;  %p5893_p1 = scmp.lt.u32.totalorder %s5889_s30, %s6227_s2 }
   0x8   :  { %p5895_p2 = pnand %p5893_p1, %p5890_p0 }
   0xa   :  { %5898 = shalt.err (!%p5895_p2)
}
   0xb   :  { %s5899_s12 = scalar_lea.vmem %s37_s25, 64  ;;  %p5904_p4 = scmp.lt.s32.totalorder %s37_s25, %s37_s25 }
   0xc   :  { %p5900_p3 = scmp.ne.s32.totalorder %s37_s25, %s5899_s12  ;;  %p5905_p5 = scmp.lt.s32.totalorder %s5899_s12, %s5899_s12 }
   0xe   :  { %p5906_p6 = por %p5905_p5, %p5904_p4 }
  0x10   :  { %p5907_p7 = pnand %p5906_p6, %p5900_p3 }
  0x12   :  { %5910 = shalt.err (!%p5907_p7)
}
  0x13   :  { %39 = dma.hbm_to_vmem [thread:$0]  %s6227_s2, 64, %s37_s25, [#allocation5]  }
  0x14   :  { %s5911_s17 = scalar_lea.hbm %s6229_s4, 64 }
  0x15   :  { %p5912_p8 = scmp.ne.s32.totalorder %s6229_s4, %s5911_s17  ;;  %p5915_p9 = scmp.lt.u32.totalorder %s5911_s17, %s6229_s4 }
  0x17   :  { %p5917_p10 = pnand %p5915_p9, %p5912_p8 }
  0x19   :  { %5920 = shalt.err (!%p5917_p10)
}
  0x1a   :  { %s5921_s22 = scalar_lea.vmem %s59_s27, 64  ;;  %p5926_p12 = scmp.lt.s32.totalorder %s59_s27, %s59_s27 }
  0x1b   :  { %p5922_p11 = scmp.ne.s32.totalorder %s59_s27, %s5921_s22  ;;  %p5927_p13 = scmp.lt.s32.totalorder %s5921_s22, %s5921_s22 }
  0x1d   :  { %p5928_p0 = por %p5927_p13, %p5926_p12 }
  0x1f   :  { %p5929_p1 = pnand %p5928_p0, %p5922_p11 }
  0x21   :  { %5932 = shalt.err (!%p5929_p1)
}
  0x22   :  { %61 = dma.hbm_to_vmem [thread:$0]  %s6229_s4, 64, %s59_s27, [#allocation8]  }
  0x23   :  { %s6031_s24 = smov [#allocation2]   ;;  %s5933_s29 = scalar_lea.hbm %s6226_s1, 50176 }
  0x24   :  { %s23_s25 = sshll.u32 %s6031_s24, 4  ;;  %p5934_p2 = scmp.ne.s32.totalorder %s6226_s1, %s5933_s29  ;;  %s24_s25 = int_to_ptr.vmem [resolvable:$true] %s23_s25 }
  0x25   :  { %p5937_p3 = scmp.lt.u32.totalorder %s5933_s29, %s6226_s1 }
  0x27   :  { %p5939_p4 = pnand %p5937_p3, %p5934_p2 }
  0x29   :  { %5942 = shalt.err (!%p5939_p4)
}
  0x2a   :  { %s5943_s11 = scalar_lea.vmem %s24_s25, 50176  ;;  %p5948_p6 = scmp.lt.s32.totalorder %s24_s25, %s24_s25 }
  0x2b   :  { %p5944_p5 = scmp.ne.s32.totalorder %s24_s25, %s5943_s11  ;;  %p5949_p7 = scmp.lt.s32.totalorder %s5943_s11, %s5943_s11 }
  0x2d   :  { %p5950_p8 = por %p5949_p7, %p5948_p6 }
  0x2f   :  { %p5951_p9 = pnand %p5950_p8, %p5944_p5 }
  0x31   :  { %5954 = shalt.err (!%p5951_p9)
}
  0x32   :  { %s6032_s4 = smov 256   ;;  %s6033_s27 = smov 16  }
  0x33   :  { %29 = dma.hbm_to_vmem [thread:$0]  %s6226_s1, 50176, %s24_s25, [#allocation3], %s6032_s4, %s6032_s4, %s6033_s27  }
  0x34   :  { %s6034_s14 = smov [#allocation6]   ;;  %s6035_s16 = smov [#allocation9]  }
  0x35   :  { %s45_s15 = sshll.u32 %s6034_s14, 4  ;;  %s67_s17 = sshll.u32 %s6035_s16, 4  ;;  %s46_s15 = int_to_ptr.vmem [resolvable:$true] %s45_s15  ;;  %s68_s17 = int_to_ptr.vmem [resolvable:$true] %s67_s17 }
  0x36   :  { %s5955_s20 = scalar_lea.hbm %s6228_s3, 16384 }
  0x37   :  { %p5956_p10 = scmp.ne.s32.totalorder %s6228_s3, %s5955_s20  ;;  %p5959_p11 = scmp.lt.u32.totalorder %s5955_s20, %s6228_s3 }
  0x39   :  { %p5961_p12 = pnand %p5959_p11, %p5956_p10 }
  0x3b   :  { %5964 = shalt.err (!%p5961_p12)
}
  0x3c   :  { %s5965_s1 = scalar_lea.vmem %s46_s15, 16384  ;;  %p5970_p0 = scmp.lt.s32.totalorder %s46_s15, %s46_s15 }
  0x3d   :  { %p5966_p13 = scmp.ne.s32.totalorder %s46_s15, %s5965_s1  ;;  %p5971_p1 = scmp.lt.s32.totalorder %s5965_s1, %s5965_s1 }
  0x3f   :  { %p5972_p2 = por %p5971_p1, %p5970_p0 }
  0x41   :  { %p5973_p3 = pnand %p5972_p2, %p5966_p13 }
  0x43   :  { %5976 = shalt.err (!%p5973_p3)
}
  0x44   :  { %51 = dma.hbm_to_vmem [thread:$0]  %s6228_s3, 16384, %s46_s15, [#allocation5], %s6032_s4, %s6032_s4, %s6033_s27  }
  0x45   :  { %s5977_s29 = scalar_lea.hbm %s6230_s5, 4096 }
  0x46   :  { %p5978_p4 = scmp.ne.s32.totalorder %s6230_s5, %s5977_s29  ;;  %p5981_p5 = scmp.lt.u32.totalorder %s5977_s29, %s6230_s5 }
  0x48   :  { %p5983_p6 = pnand %p5981_p5, %p5978_p4 }
  0x4a   :  { %5986 = shalt.err (!%p5983_p6)
}
  0x4b   :  { %s5987_s11 = scalar_lea.vmem %s68_s17, 4096  ;;  %p5992_p8 = scmp.lt.s32.totalorder %s68_s17, %s68_s17 }
  0x4c   :  { %p5988_p7 = scmp.ne.s32.totalorder %s68_s17, %s5987_s11  ;;  %p5993_p9 = scmp.lt.s32.totalorder %s5987_s11, %s5987_s11 }
  0x4e   :  { %p5994_p10 = por %p5993_p9, %p5992_p8 }
  0x50   :  { %p5995_p11 = pnand %p5994_p10, %p5988_p7 }
  0x52   :  { %5998 = shalt.err (!%p5995_p11)
}
  0x53   :  { %s6036_s3 = smov 64   ;;  %s6037_s4 = smov 4  }
  0x54   :  { %73 = dma.hbm_to_vmem [thread:$0]  %s6230_s5, 4096, %s68_s17, [#allocation8], %s6036_s3, %s6036_s3, %s6037_s4  }
  0x55   :  { %s6038_s13 = smov [#allocation10]   ;;  %s5999_s18 = scalar_lea.hbm %s6231_s6, 16 }
  0x56   :  { %s80_s14 = sshll.u32 %s6038_s13, 4  ;;  %p6000_p12 = scmp.ne.s32.totalorder %s6231_s6, %s5999_s18  ;;  %s81_s14 = int_to_ptr.vmem [resolvable:$true] %s80_s14 }
  0x57   :  { %p6003_p13 = scmp.lt.u32.totalorder %s5999_s18, %s6231_s6 }
  0x59   :  { %p6005_p0 = pnand %p6003_p13, %p6000_p12 }
  0x5b   :  { %6008 = shalt.err (!%p6005_p0)
}
  0x5c   :  { %s6009_s2 = scalar_lea.vmem %s81_s14, 16  ;;  %s6013_s5 = scalar_lea.vmem %s81_s14, 32 }
  0x5d   :  { %p6010_p1 = scmp.ne.s32.totalorder %s81_s14, %s6009_s2  ;;  %p6014_p2 = scmp.lt.s32.totalorder %s81_s14, %s81_s14 }
  0x5e   :  { %p6015_p3 = scmp.lt.s32.totalorder %s6013_s5, %s6009_s2 }
  0x60   :  { %p6016_p4 = por %p6015_p3, %p6014_p2 }
  0x62   :  { %p6017_p5 = pnand %p6016_p4, %p6010_p1 }
  0x64   :  { %6020 = shalt.err (!%p6017_p5)
}
  0x65   :  { %83 = dma.hbm_to_vmem [thread:$0]  %s6231_s6, 16, %s81_s14, [#allocation11]  }
  0x66   :  { %6021 = dma.done.wait [#allocation3], 50176  }
  0x67   :  { %6022 = vsyncadd [#allocation3], 4294917120 }
  0x68   :  { %6023 = dma.done.wait [#allocation5], 16448  }
  0x69   :  { %6024 = vsyncadd [#allocation5], 4294950848 }
  0x6a   :  { %6025 = dma.done.wait [#allocation8], 4160  }
  0x6b   :  { %6026 = vsyncadd [#allocation8], 4294963136 }
  0x6c   :  { %6027 = dma.done.wait [#allocation11], 16  }
  0x6d   :  { %6028 = vsyncadd [#allocation11], 4294967280  ;;  %v5077_v0 = vld [vmem:[#allocation2 + $0x4] ss:$16 sps:$4 sm:$0xff]   ;;  %v5079_v1 = vld [vmem:[#allocation2 + $0xc] ss:$16 sps:$4 sm:$0xff]  }
  0x6e   :  { %2507 = vmatprep.subr.bf16.mxu0 %v5077_v0  ;;  %v5081_v2 = vld [vmem:[#allocation2] ss:$16 sps:$4 sm:$0xff]   ;;  %v5082_v3 = vld [vmem:[#allocation2 + $0x8] ss:$16 sps:$4 sm:$0xff]   ;;  %2794 = vmatprep.subr.bf16.mxu1 %v5079_v1  ;;  %v5083_v4 = vld [vmem:[#allocation2 + $0x24] ss:$16 sps:$4 sm:$0xff]  }
  0x6f   :  { %2508 = vmatpush1.bf16.msra.mxu0 %v5081_v2  ;;  %2795 = vmatpush1.bf16.msra.mxu1 %v5082_v3  ;;  %v5085_v5 = vld [vmem:[#allocation2 + $0x2c] ss:$16 sps:$4 sm:$0xff]   ;;  %v5087_v6 = vld [vmem:[#allocation2 + $0x20] ss:$16 sps:$4 sm:$0xff]   ;;  %v5088_v7 = vld [vmem:[#allocation2 + $0x28] ss:$16 sps:$4 sm:$0xff]  }
  0x70   :  { %2509 = vmatprep.subr.bf16.mxu0 %v5083_v4  ;;  %2796 = vmatprep.subr.bf16.mxu1 %v5085_v5  ;;  %v5089_v8 = vld [vmem:[#allocation2 + $0x44] ss:$16 sps:$4 sm:$0xff]   ;;  %v5091_v9 = vld [vmem:[#allocation2 + $0x4c] ss:$16 sps:$4 sm:$0xff]   ;;  %v5093_v10 = vld [vmem:[#allocation2 + $0x40] ss:$16 sps:$4 sm:$0xff]  }
  0x71   :  { %v5094_v11 = vld [vmem:[#allocation2 + $0x48] ss:$16 sps:$4 sm:$0xff]   ;;  %v5095_v12 = vld [vmem:[#allocation2 + $0x64] ss:$16 sps:$4 sm:$0xff]   ;;  %v5097_v13 = vld [vmem:[#allocation2 + $0x6c] ss:$16 sps:$4 sm:$0xff]  }
  0x72   :  { %v5099_v14 = vld [vmem:[#allocation2 + $0x60] ss:$16 sps:$4 sm:$0xff]   ;;  %v5100_v15 = vld [vmem:[#allocation2 + $0x68] ss:$16 sps:$4 sm:$0xff]   ;;  %v5101_v16 = vld [vmem:[#allocation2 + $0x84] ss:$16 sps:$4 sm:$0xff]  }
  0x73   :  { %2510 = vmatpush1.bf16.msra.mxu0 %v5087_v6  ;;  %2797 = vmatpush1.bf16.msra.mxu1 %v5088_v7  ;;  %v5103_v17 = vld [vmem:[#allocation2 + $0x8c] ss:$16 sps:$4 sm:$0xff]   ;;  %v5105_v18 = vld [vmem:[#allocation2 + $0x80] ss:$16 sps:$4 sm:$0xff]   ;;  %v5106_v19 = vld [vmem:[#allocation2 + $0x88] ss:$16 sps:$4 sm:$0xff]  }
  0x74   :  { %2511 = vmatprep.subr.bf16.mxu0 %v5089_v8  ;;  %2798 = vmatprep.subr.bf16.mxu1 %v5091_v9  ;;  %v5107_v20 = vld [vmem:[#allocation2 + $0xa4] ss:$16 sps:$4 sm:$0xff]   ;;  %v5109_v21 = vld [vmem:[#allocation2 + $0xac] ss:$16 sps:$4 sm:$0xff]   ;;  %v5111_v22 = vld [vmem:[#allocation2 + $0xa0] ss:$16 sps:$4 sm:$0xff]  }
  0x75   :  { %v5112_v23 = vld [vmem:[#allocation2 + $0xa8] ss:$16 sps:$4 sm:$0xff]   ;;  %v5113_v24 = vld [vmem:[#allocation2 + $0xc4] ss:$16 sps:$4 sm:$0xff]   ;;  %v5115_v25 = vld [vmem:[#allocation2 + $0xcc] ss:$16 sps:$4 sm:$0xff]  }
  0x76   :  { %v5117_v26 = vld [vmem:[#allocation2 + $0xc0] ss:$16 sps:$4 sm:$0xff]   ;;  %v5118_v27 = vld [vmem:[#allocation2 + $0xc8] ss:$16 sps:$4 sm:$0xff]   ;;  %v5119_v28 = vld [vmem:[#allocation2 + $0xe4] ss:$16 sps:$4 sm:$0xff]  }
  0x77   :  { %2512 = vmatpush1.bf16.msra.mxu0 %v5093_v10  ;;  %2799 = vmatpush1.bf16.msra.mxu1 %v5094_v11  ;;  %v5121_v29 = vld [vmem:[#allocation2 + $0xec] ss:$16 sps:$4 sm:$0xff]   ;;  %v5123_v30 = vld [vmem:[#allocation2 + $0xe0] ss:$16 sps:$4 sm:$0xff]   ;;  %v5124_v31 = vld [vmem:[#allocation2 + $0xe8] ss:$16 sps:$4 sm:$0xff]  }
  0x78   :  { %2513 = vmatprep.subr.bf16.mxu0 %v5095_v12  ;;  %2800 = vmatprep.subr.bf16.mxu1 %v5097_v13  ;;  %v5125_v32 = vld [vmem:[#allocation2 + $0x104] ss:$16 sps:$4 sm:$0xff]   ;;  %v5127_v33 = vld [vmem:[#allocation2 + $0x10c] ss:$16 sps:$4 sm:$0xff]   ;;  %v5129_v34 = vld [vmem:[#allocation2 + $0x100] ss:$16 sps:$4 sm:$0xff]  }
  0x79   :  { %v5130_v35 = vld [vmem:[#allocation2 + $0x108] ss:$16 sps:$4 sm:$0xff]   ;;  %v5131_v36 = vld [vmem:[#allocation2 + $0x124] ss:$16 sps:$4 sm:$0xff]   ;;  %v5133_v37 = vld [vmem:[#allocation2 + $0x12c] ss:$16 sps:$4 sm:$0xff]  }
  0x7a   :  { %v5135_v38 = vld [vmem:[#allocation2 + $0x120] ss:$16 sps:$4 sm:$0xff]   ;;  %v5136_v39 = vld [vmem:[#allocation2 + $0x128] ss:$16 sps:$4 sm:$0xff]   ;;  %v5137_v40 = vld [vmem:[#allocation2 + $0x144] ss:$16 sps:$4 sm:$0xff]  }
  0x7b   :  { %2514 = vmatpush1.bf16.msra.mxu0 %v5099_v14  ;;  %2801 = vmatpush1.bf16.msra.mxu1 %v5100_v15  ;;  %v5139_v41 = vld [vmem:[#allocation2 + $0x14c] ss:$16 sps:$4 sm:$0xff]   ;;  %v5141_v42 = vld [vmem:[#allocation2 + $0x140] ss:$16 sps:$4 sm:$0xff]   ;;  %v5142_v43 = vld [vmem:[#allocation2 + $0x148] ss:$16 sps:$4 sm:$0xff]  }
  0x7c   :  { %2515 = vmatprep.subr.bf16.mxu0 %v5101_v16  ;;  %2802 = vmatprep.subr.bf16.mxu1 %v5103_v17  ;;  %v5143_v44 = vld [vmem:[#allocation2 + $0x164] ss:$16 sps:$4 sm:$0xff]   ;;  %v5145_v45 = vld [vmem:[#allocation2 + $0x16c] ss:$16 sps:$4 sm:$0xff]   ;;  %v5147_v47 = vld [vmem:[#allocation2 + $0x160] ss:$16 sps:$4 sm:$0xff]  }
  0x7d   :  { %v104_v46 = vld [vmem:[%s6225_s0 + $0x8] sm:$0xff]  ;;  %v5149_v50 = vld [vmem:[#allocation2 + $0x184] ss:$16 sps:$4 sm:$0xff]   ;;  %v5153_v52 = vld [vmem:[#allocation2 + $0x180] ss:$16 sps:$4 sm:$0xff]   ;;  %vm2503_vm0 = vcmask 261120  }
  0x7e   :  { %v117_v48 = vpack.c.bf16 %v104_v46, %v104_v46  ;;  %v5148_v49 = vld [vmem:[#allocation2 + $0x168] ss:$16 sps:$4 sm:$0xff]   ;;  %v5151_v51 = vld [vmem:[#allocation2 + $0x18c] ss:$16 sps:$4 sm:$0xff]   ;;  %v5155_v54 = vld [vmem:[#allocation2 + $0x1a4] ss:$16 sps:$4 sm:$0xff]  }
  0x7f   :  { %2516 = vmatpush1.bf16.msra.mxu0 %v5105_v18  ;;  %2803 = vmatpush1.bf16.msra.mxu1 %v5106_v19  ;;  %v5154_v53 = vld [vmem:[#allocation2 + $0x188] ss:$16 sps:$4 sm:$0xff]   ;;  %v5157_v55 = vld [vmem:[#allocation2 + $0x1ac] ss:$16 sps:$4 sm:$0xff]   ;;  %v5159_v56 = vld [vmem:[#allocation2 + $0x1a0] ss:$16 sps:$4 sm:$0xff]  }
  0x80   :  { %2517 = vmatprep.subr.bf16.mxu0 %v5107_v20  ;;  %2804 = vmatprep.subr.bf16.mxu1 %v5109_v21  ;;  %v5160_v57 = vld [vmem:[#allocation2 + $0x1a8] ss:$16 sps:$4 sm:$0xff]   ;;  %v5161_v58 = vld [vmem:[#allocation2 + $0x1c4] ss:$16 sps:$4 sm:$0xff]   ;;  %v5163_v59 = vld [vmem:[#allocation2 + $0x1cc] ss:$16 sps:$4 sm:$0xff]  }
  0x81   :  { %2539 = vmatprep.mubr.bf16.mxu0 %v117_v48  ;;  %2826 = vmatprep.mubr.bf16.mxu1 %v117_v48  ;;  %v5165_v60 = vld [vmem:[#allocation2 + $0x1c0] ss:$16 sps:$4 sm:$0xff]   ;;  %v5166_v61 = vld [vmem:[#allocation2 + $0x1c8] ss:$16 sps:$4 sm:$0xff]   ;;  %v5167_v62 = vld [vmem:[#allocation2 + $0x1e4] ss:$16 sps:$4 sm:$0xff]  }
  0x82   :  { %v5169_v63 = vld [vmem:[#allocation2 + $0x1ec] ss:$16 sps:$4 sm:$0xff]   ;;  %v5171_v0 = vld [vmem:[#allocation2 + $0x1e0] ss:$16 sps:$4 sm:$0xff]   ;;  %v5172_v1 = vld [vmem:[#allocation2 + $0x1e8] ss:$16 sps:$4 sm:$0xff]  }
  0x83   :  { %2518 = vmatpush1.bf16.msra.mxu0 %v5111_v22  ;;  %2805 = vmatpush1.bf16.msra.mxu1 %v5112_v23  ;;  %v103_v2 = vld [vmem:[%s6225_s0] sm:$0xff]  ;;  %v5178_v4 = vld [vmem:[#allocation2 + $0x20c] ss:$16 sps:$4 sm:$0xff]   ;;  %v5176_v7 = vld [vmem:[#allocation2 + $0x208] ss:$16 sps:$4 sm:$0xff]  }
  0x84   :  { %2519 = vmatprep.subr.bf16.mxu0 %v5113_v24  ;;  %2806 = vmatprep.subr.bf16.mxu1 %v5115_v25  ;;  %v5175_v3 = vld [vmem:[#allocation2 + $0x204] ss:$16 sps:$4 sm:$0xff]   ;;  %v116_v5 = vpack.c.bf16 %v103_v2, %v103_v2  ;;  %v5173_v6 = vld [vmem:[#allocation2 + $0x200] ss:$16 sps:$4 sm:$0xff]   ;;  %v5184_v9 = vld [vmem:[#allocation2 + $0x22c] ss:$16 sps:$4 sm:$0xff]  }
  0x85   :  { %v5181_v8 = vld [vmem:[#allocation2 + $0x224] ss:$16 sps:$4 sm:$0xff]   ;;  %v5179_v10 = vld [vmem:[#allocation2 + $0x220] ss:$16 sps:$4 sm:$0xff]   ;;  %v5182_v11 = vld [vmem:[#allocation2 + $0x228] ss:$16 sps:$4 sm:$0xff]  }
  0x86   :  { %v5187_v12 = vld [vmem:[#allocation2 + $0x244] ss:$16 sps:$4 sm:$0xff]   ;;  %v5190_v13 = vld [vmem:[#allocation2 + $0x24c] ss:$16 sps:$4 sm:$0xff]   ;;  %v5185_v14 = vld [vmem:[#allocation2 + $0x240] ss:$16 sps:$4 sm:$0xff]  }
  0x87   :  { %2520 = vmatpush1.bf16.msra.mxu0 %v5117_v26  ;;  %2807 = vmatpush1.bf16.msra.mxu1 %v5118_v27  ;;  %v5188_v15 = vld [vmem:[#allocation2 + $0x248] ss:$16 sps:$4 sm:$0xff]   ;;  %v5193_v16 = vld [vmem:[#allocation2 + $0x264] ss:$16 sps:$4 sm:$0xff]   ;;  %v5196_v17 = vld [vmem:[#allocation2 + $0x26c] ss:$16 sps:$4 sm:$0xff]  }
  0x88   :  { %2521 = vmatprep.subr.bf16.mxu0 %v5119_v28  ;;  %2808 = vmatprep.subr.bf16.mxu1 %v5121_v29  ;;  %v5191_v18 = vld [vmem:[#allocation2 + $0x260] ss:$16 sps:$4 sm:$0xff]   ;;  %v5194_v19 = vld [vmem:[#allocation2 + $0x268] ss:$16 sps:$4 sm:$0xff]   ;;  %v5199_v20 = vld [vmem:[#allocation2 + $0x284] ss:$16 sps:$4 sm:$0xff]  }
  0x89   :  { %v5202_v21 = vld [vmem:[#allocation2 + $0x28c] ss:$16 sps:$4 sm:$0xff]   ;;  %v5197_v22 = vld [vmem:[#allocation2 + $0x280] ss:$16 sps:$4 sm:$0xff]   ;;  %v5200_v23 = vld [vmem:[#allocation2 + $0x288] ss:$16 sps:$4 sm:$0xff]  }
  0x8a   :  { %v5205_v24 = vld [vmem:[#allocation2 + $0x2a4] ss:$16 sps:$4 sm:$0xff]   ;;  %v5208_v25 = vld [vmem:[#allocation2 + $0x2ac] ss:$16 sps:$4 sm:$0xff]   ;;  %v5203_v26 = vld [vmem:[#allocation2 + $0x2a0] ss:$16 sps:$4 sm:$0xff]  }
  0x8b   :  { %2522 = vmatpush1.bf16.msra.mxu0 %v5123_v30  ;;  %2809 = vmatpush1.bf16.msra.mxu1 %v5124_v31  ;;  %v5206_v27 = vld [vmem:[#allocation2 + $0x2a8] ss:$16 sps:$4 sm:$0xff]   ;;  %v5211_v28 = vld [vmem:[#allocation2 + $0x2c4] ss:$16 sps:$4 sm:$0xff]   ;;  %v5214_v29 = vld [vmem:[#allocation2 + $0x2cc] ss:$16 sps:$4 sm:$0xff]  }
  0x8c   :  { %2523 = vmatprep.subr.bf16.mxu0 %v5125_v32  ;;  %2810 = vmatprep.subr.bf16.mxu1 %v5127_v33  ;;  %v106_v30 = vld [vmem:[%s6225_s0 + $0x18] sm:$0xff]  ;;  %v5209_v31 = vld [vmem:[#allocation2 + $0x2c0] ss:$16 sps:$4 sm:$0xff]   ;;  %v5235_v46 = vld [vmem:[#allocation2 + $0x344] ss:$16 sps:$4 sm:$0xff]  }
  0x8d   :  { %v119_v32 = vpack.c.bf16 %v106_v30, %v106_v30  ;;  %v5212_v33 = vld [vmem:[#allocation2 + $0x2c8] ss:$16 sps:$4 sm:$0xff]   ;;  %v5233_v48 = vld [vmem:[#allocation2 + $0x340] ss:$16 sps:$4 sm:$0xff]   ;;  %v5265_v2 = vld [vmem:[#allocation2 + $0x3e4] ss:$16 sps:$4 sm:$0xff]  }
  0x8e   :  { %v5301_v30 = vld [vmem:[#allocation2 + $0x4a4] ss:$16 sps:$4 sm:$0xff]  }
  0x8f   :  { %2524 = vmatpush1.bf16.msra.mxu0 %v5129_v34  ;;  %2811 = vmatpush1.bf16.msra.mxu1 %v5130_v35  ;;  %v5217_v34 = vld [vmem:[#allocation2 + $0x2e4] ss:$16 sps:$4 sm:$0xff]   ;;  %v5220_v35 = vld [vmem:[#allocation2 + $0x2ec] ss:$16 sps:$4 sm:$0xff]  }
  0x90   :  { %2525 = vmatprep.subr.bf16.mxu0 %v5131_v36  ;;  %2812 = vmatprep.subr.bf16.mxu1 %v5133_v37  ;;  %v5215_v36 = vld [vmem:[#allocation2 + $0x2e0] ss:$16 sps:$4 sm:$0xff]   ;;  %v5218_v37 = vld [vmem:[#allocation2 + $0x2e8] ss:$16 sps:$4 sm:$0xff]  }
  0x93   :  { %2526 = vmatpush1.bf16.msra.mxu0 %v5135_v38  ;;  %2813 = vmatpush1.bf16.msra.mxu1 %v5136_v39  ;;  %v5223_v38 = vld [vmem:[#allocation2 + $0x304] ss:$16 sps:$4 sm:$0xff]   ;;  %v5226_v39 = vld [vmem:[#allocation2 + $0x30c] ss:$16 sps:$4 sm:$0xff]  }
  0x94   :  { %2527 = vmatprep.subr.bf16.mxu0 %v5137_v40  ;;  %2814 = vmatprep.subr.bf16.mxu1 %v5139_v41  ;;  %v5221_v40 = vld [vmem:[#allocation2 + $0x300] ss:$16 sps:$4 sm:$0xff]   ;;  %v5224_v41 = vld [vmem:[#allocation2 + $0x308] ss:$16 sps:$4 sm:$0xff]  }
  0x97   :  { %2528 = vmatpush1.bf16.msra.mxu0 %v5141_v42  ;;  %2815 = vmatpush1.bf16.msra.mxu1 %v5142_v43  ;;  %v5229_v42 = vld [vmem:[#allocation2 + $0x324] ss:$16 sps:$4 sm:$0xff]   ;;  %v5232_v43 = vld [vmem:[#allocation2 + $0x32c] ss:$16 sps:$4 sm:$0xff]  }
  0x98   :  { %2529 = vmatprep.subr.bf16.mxu0 %v5143_v44  ;;  %2816 = vmatprep.subr.bf16.mxu1 %v5145_v45  ;;  %v5227_v44 = vld [vmem:[#allocation2 + $0x320] ss:$16 sps:$4 sm:$0xff]   ;;  %v5230_v45 = vld [vmem:[#allocation2 + $0x328] ss:$16 sps:$4 sm:$0xff]  }
  0x9b   :  { %2530 = vmatpush1.bf16.msra.mxu0 %v5147_v47  ;;  %2817 = vmatpush1.bf16.msra.mxu1 %v5148_v49  ;;  %v5238_v47 = vld [vmem:[#allocation2 + $0x34c] ss:$16 sps:$4 sm:$0xff]   ;;  %v5236_v49 = vld [vmem:[#allocation2 + $0x348] ss:$16 sps:$4 sm:$0xff]  }
  0x9c   :  { %2531 = vmatprep.subr.bf16.mxu0 %v5149_v50  ;;  %2818 = vmatprep.subr.bf16.mxu1 %v5151_v51  ;;  %v5241_v50 = vld [vmem:[#allocation2 + $0x364] ss:$16 sps:$4 sm:$0xff]   ;;  %v5244_v51 = vld [vmem:[#allocation2 + $0x36c] ss:$16 sps:$4 sm:$0xff]  }
  0x9f   :  { %2532 = vmatpush1.bf16.msra.mxu0 %v5153_v52  ;;  %2819 = vmatpush1.bf16.msra.mxu1 %v5154_v53  ;;  %v5239_v52 = vld [vmem:[#allocation2 + $0x360] ss:$16 sps:$4 sm:$0xff]   ;;  %v5242_v53 = vld [vmem:[#allocation2 + $0x368] ss:$16 sps:$4 sm:$0xff]  }
  0xa0   :  { %2533 = vmatprep.subr.bf16.mxu0 %v5155_v54  ;;  %2820 = vmatprep.subr.bf16.mxu1 %v5157_v55  ;;  %v5247_v54 = vld [vmem:[#allocation2 + $0x384] ss:$16 sps:$4 sm:$0xff]   ;;  %v5250_v55 = vld [vmem:[#allocation2 + $0x38c] ss:$16 sps:$4 sm:$0xff]  }
  0xa3   :  { %2534 = vmatpush1.bf16.msra.mxu0 %v5159_v56  ;;  %2821 = vmatpush1.bf16.msra.mxu1 %v5160_v57  ;;  %v5245_v56 = vld [vmem:[#allocation2 + $0x380] ss:$16 sps:$4 sm:$0xff]   ;;  %v5248_v57 = vld [vmem:[#allocation2 + $0x388] ss:$16 sps:$4 sm:$0xff]  }
  0xa4   :  { %2535 = vmatprep.subr.bf16.mxu0 %v5161_v58  ;;  %2822 = vmatprep.subr.bf16.mxu1 %v5163_v59  ;;  %v5253_v58 = vld [vmem:[#allocation2 + $0x3a4] ss:$16 sps:$4 sm:$0xff]   ;;  %v5256_v59 = vld [vmem:[#allocation2 + $0x3ac] ss:$16 sps:$4 sm:$0xff]  }
  0xa7   :  { %2536 = vmatpush1.bf16.msra.mxu0 %v5165_v60  ;;  %2823 = vmatpush1.bf16.msra.mxu1 %v5166_v61  ;;  %v5251_v60 = vld [vmem:[#allocation2 + $0x3a0] ss:$16 sps:$4 sm:$0xff]   ;;  %v5254_v61 = vld [vmem:[#allocation2 + $0x3a8] ss:$16 sps:$4 sm:$0xff]  }
  0xa8   :  { %2537 = vmatprep.subr.bf16.mxu0 %v5167_v62  ;;  %2824 = vmatprep.subr.bf16.mxu1 %v5169_v63  ;;  %v5259_v62 = vld [vmem:[#allocation2 + $0x3c4] ss:$16 sps:$4 sm:$0xff]   ;;  %v5262_v63 = vld [vmem:[#allocation2 + $0x3cc] ss:$16 sps:$4 sm:$0xff]  }
  0xab   :  { %2538 = vmatpush1.bf16.msra.mxu0 %v5171_v0  ;;  %2825 = vmatpush1.bf16.msra.mxu1 %v5172_v1  ;;  %v5257_v0 = vld [vmem:[#allocation2 + $0x3c0] ss:$16 sps:$4 sm:$0xff]   ;;  %v5260_v1 = vld [vmem:[#allocation2 + $0x3c8] ss:$16 sps:$4 sm:$0xff]  }
  0xac   :  { %2548 = vmatprep.subr.bf16.mxu0 %v5175_v3  ;;  %2835 = vmatprep.subr.bf16.mxu1 %v5178_v4  ;;  %v5268_v3 = vld [vmem:[#allocation2 + $0x3ec] ss:$16 sps:$4 sm:$0xff]   ;;  %v5263_v4 = vld [vmem:[#allocation2 + $0x3e0] ss:$16 sps:$4 sm:$0xff]  }
  0xae   :  { %2540 = vmatmul.mubr.bf16.vlgmr.msra.gmra.mrb[0].mxu0 %v116_v5  ;;  %2827 = vmatmul.mubr.bf16.vlgmr.msra.gmra.mrb[0].mxu1 %v116_v5  ;;  %v5266_v5 = vld [vmem:[#allocation2 + $0x3e8] ss:$16 sps:$4 sm:$0xff]  }
  0xaf   :  { %2549 = vmatpush1.bf16.msra.mxu0 %v5173_v6  ;;  %2836 = vmatpush1.bf16.msra.mxu1 %v5176_v7  ;;  %v5271_v6 = vld [vmem:[#allocation2 + $0x404] ss:$16 sps:$4 sm:$0xff]  }
  0xb0   :  { %2550 = vmatprep.subr.bf16.mxu0 %v5181_v8  ;;  %2837 = vmatprep.subr.bf16.mxu1 %v5184_v9  ;;  %v105_v7 = vld [vmem:[%s6225_s0 + $0x10] sm:$0xff]  ;;  %v5274_v8 = vld [vmem:[#allocation2 + $0x40c] ss:$16 sps:$4 sm:$0xff]  }
  0xb1   :  { %2580 = vmatprep.mubr.bf16.mxu0 %v119_v32  ;;  %2867 = vmatprep.mubr.bf16.mxu1 %v119_v32  ;;  %v5269_v9 = vld [vmem:[#allocation2 + $0x400] ss:$16 sps:$4 sm:$0xff]  }
  0xb2   :  { %v5299_v32 = vld [vmem:[#allocation2 + $0x4a0] ss:$16 sps:$4 sm:$0xff]  }
  0xb3   :  { %2551 = vmatpush1.bf16.msra.mxu0 %v5179_v10  ;;  %2838 = vmatpush1.bf16.msra.mxu1 %v5182_v11  ;;  %v5272_v10 = vld [vmem:[#allocation2 + $0x408] ss:$16 sps:$4 sm:$0xff]   ;;  %v118_v11 = vpack.c.bf16 %v105_v7, %v105_v7  ;;  %v5364_v7 = vld [vmem:[#allocation2 + $0x5ec] ss:$16 sps:$4 sm:$0xff]  }
  0xb4   :  { %2552 = vmatprep.subr.bf16.mxu0 %v5187_v12  ;;  %2839 = vmatprep.subr.bf16.mxu1 %v5190_v13  ;;  %v5277_v12 = vld [vmem:[#allocation2 + $0x424] ss:$16 sps:$4 sm:$0xff]   ;;  %v5280_v13 = vld [vmem:[#allocation2 + $0x42c] ss:$16 sps:$4 sm:$0xff]  }
  0xb7   :  { %2553 = vmatpush1.bf16.msra.mxu0 %v5185_v14  ;;  %2840 = vmatpush1.bf16.msra.mxu1 %v5188_v15  ;;  %v108_v14 = vld [vmem:[%s6225_s0 + $0x28] sm:$0xff] }
  0xb8   :  { %2554 = vmatprep.subr.bf16.mxu0 %v5193_v16  ;;  %2841 = vmatprep.subr.bf16.mxu1 %v5196_v17  ;;  %v121_v15 = vpack.c.bf16 %v108_v14, %v108_v14  ;;  %v5275_v16 = vld [vmem:[#allocation2 + $0x420] ss:$16 sps:$4 sm:$0xff]   ;;  %v5278_v17 = vld [vmem:[#allocation2 + $0x428] ss:$16 sps:$4 sm:$0xff]  }
  0xb9   :  { %v5368_v14 = vld [vmem:[#allocation2 + $0x608] ss:$16 sps:$4 sm:$0xff]  }
  0xbb   :  { %2555 = vmatpush1.bf16.msra.mxu0 %v5191_v18  ;;  %2842 = vmatpush1.bf16.msra.mxu1 %v5194_v19  ;;  %v5283_v18 = vld [vmem:[#allocation2 + $0x444] ss:$16 sps:$4 sm:$0xff]   ;;  %v5286_v19 = vld [vmem:[#allocation2 + $0x44c] ss:$16 sps:$4 sm:$0xff]  }
  0xbc   :  { %2556 = vmatprep.subr.bf16.mxu0 %v5199_v20  ;;  %2843 = vmatprep.subr.bf16.mxu1 %v5202_v21  ;;  %v5281_v20 = vld [vmem:[#allocation2 + $0x440] ss:$16 sps:$4 sm:$0xff]   ;;  %v5284_v21 = vld [vmem:[#allocation2 + $0x448] ss:$16 sps:$4 sm:$0xff]  }
  0xbf   :  { %2557 = vmatpush1.bf16.msra.mxu0 %v5197_v22  ;;  %2844 = vmatpush1.bf16.msra.mxu1 %v5200_v23  ;;  %v5289_v22 = vld [vmem:[#allocation2 + $0x464] ss:$16 sps:$4 sm:$0xff]   ;;  %v5292_v23 = vld [vmem:[#allocation2 + $0x46c] ss:$16 sps:$4 sm:$0xff]  }
  0xc0   :  { %2558 = vmatprep.subr.bf16.mxu0 %v5205_v24  ;;  %2845 = vmatprep.subr.bf16.mxu1 %v5208_v25  ;;  %v5287_v24 = vld [vmem:[#allocation2 + $0x460] ss:$16 sps:$4 sm:$0xff]   ;;  %v5290_v25 = vld [vmem:[#allocation2 + $0x468] ss:$16 sps:$4 sm:$0xff]  }
  0xc3   :  { %2559 = vmatpush1.bf16.msra.mxu0 %v5203_v26  ;;  %2846 = vmatpush1.bf16.msra.mxu1 %v5206_v27  ;;  %v5295_v26 = vld [vmem:[#allocation2 + $0x484] ss:$16 sps:$4 sm:$0xff]   ;;  %v5298_v27 = vld [vmem:[#allocation2 + $0x48c] ss:$16 sps:$4 sm:$0xff]  }
  0xc4   :  { %2560 = vmatprep.subr.bf16.mxu0 %v5211_v28  ;;  %2847 = vmatprep.subr.bf16.mxu1 %v5214_v29  ;;  %v5293_v28 = vld [vmem:[#allocation2 + $0x480] ss:$16 sps:$4 sm:$0xff]   ;;  %v5296_v29 = vld [vmem:[#allocation2 + $0x488] ss:$16 sps:$4 sm:$0xff]  }
  0xc7   :  { %2561 = vmatpush1.bf16.msra.mxu0 %v5209_v31  ;;  %2848 = vmatpush1.bf16.msra.mxu1 %v5212_v33  ;;  %v5304_v31 = vld [vmem:[#allocation2 + $0x4ac] ss:$16 sps:$4 sm:$0xff]   ;;  %v5302_v33 = vld [vmem:[#allocation2 + $0x4a8] ss:$16 sps:$4 sm:$0xff]  }
  0xc8   :  { %2562 = vmatprep.subr.bf16.mxu0 %v5217_v34  ;;  %2849 = vmatprep.subr.bf16.mxu1 %v5220_v35  ;;  %v5307_v34 = vld [vmem:[#allocation2 + $0x4c4] ss:$16 sps:$4 sm:$0xff]   ;;  %v5310_v35 = vld [vmem:[#allocation2 + $0x4cc] ss:$16 sps:$4 sm:$0xff]  }
  0xcb   :  { %2563 = vmatpush1.bf16.msra.mxu0 %v5215_v36  ;;  %2850 = vmatpush1.bf16.msra.mxu1 %v5218_v37  ;;  %v5305_v36 = vld [vmem:[#allocation2 + $0x4c0] ss:$16 sps:$4 sm:$0xff]   ;;  %v5308_v37 = vld [vmem:[#allocation2 + $0x4c8] ss:$16 sps:$4 sm:$0xff]  }
  0xcc   :  { %2564 = vmatprep.subr.bf16.mxu0 %v5223_v38  ;;  %2851 = vmatprep.subr.bf16.mxu1 %v5226_v39  ;;  %v5313_v38 = vld [vmem:[#allocation2 + $0x4e4] ss:$16 sps:$4 sm:$0xff]   ;;  %v5316_v39 = vld [vmem:[#allocation2 + $0x4ec] ss:$16 sps:$4 sm:$0xff]  }
  0xcf   :  { %2565 = vmatpush1.bf16.msra.mxu0 %v5221_v40  ;;  %2852 = vmatpush1.bf16.msra.mxu1 %v5224_v41  ;;  %v5311_v40 = vld [vmem:[#allocation2 + $0x4e0] ss:$16 sps:$4 sm:$0xff]   ;;  %v5314_v41 = vld [vmem:[#allocation2 + $0x4e8] ss:$16 sps:$4 sm:$0xff]  }
  0xd0   :  { %2566 = vmatprep.subr.bf16.mxu0 %v5229_v42  ;;  %2853 = vmatprep.subr.bf16.mxu1 %v5232_v43  ;;  %v5319_v42 = vld [vmem:[#allocation2 + $0x504] ss:$16 sps:$4 sm:$0xff]   ;;  %v5322_v43 = vld [vmem:[#allocation2 + $0x50c] ss:$16 sps:$4 sm:$0xff]  }
  0xd3   :  { %2567 = vmatpush1.bf16.msra.mxu0 %v5227_v44  ;;  %2854 = vmatpush1.bf16.msra.mxu1 %v5230_v45  ;;  %v5317_v44 = vld [vmem:[#allocation2 + $0x500] ss:$16 sps:$4 sm:$0xff]   ;;  %v5320_v45 = vld [vmem:[#allocation2 + $0x508] ss:$16 sps:$4 sm:$0xff]  }
  0xd4   :  { %2568 = vmatprep.subr.bf16.mxu0 %v5235_v46  ;;  %2855 = vmatprep.subr.bf16.mxu1 %v5238_v47  ;;  %v5325_v46 = vld [vmem:[#allocation2 + $0x524] ss:$16 sps:$4 sm:$0xff]   ;;  %v5328_v47 = vld [vmem:[#allocation2 + $0x52c] ss:$16 sps:$4 sm:$0xff]  }
  0xd7   :  { %2569 = vmatpush1.bf16.msra.mxu0 %v5233_v48  ;;  %2856 = vmatpush1.bf16.msra.mxu1 %v5236_v49  ;;  %v5323_v48 = vld [vmem:[#allocation2 + $0x520] ss:$16 sps:$4 sm:$0xff]   ;;  %v5326_v49 = vld [vmem:[#allocation2 + $0x528] ss:$16 sps:$4 sm:$0xff]  }
  0xd8   :  { %2570 = vmatprep.subr.bf16.mxu0 %v5241_v50  ;;  %2857 = vmatprep.subr.bf16.mxu1 %v5244_v51  ;;  %v5331_v50 = vld [vmem:[#allocation2 + $0x544] ss:$16 sps:$4 sm:$0xff]   ;;  %v5334_v51 = vld [vmem:[#allocation2 + $0x54c] ss:$16 sps:$4 sm:$0xff]  }
  0xdb   :  { %2571 = vmatpush1.bf16.msra.mxu0 %v5239_v52  ;;  %2858 = vmatpush1.bf16.msra.mxu1 %v5242_v53  ;;  %v5329_v52 = vld [vmem:[#allocation2 + $0x540] ss:$16 sps:$4 sm:$0xff]   ;;  %v5332_v53 = vld [vmem:[#allocation2 + $0x548] ss:$16 sps:$4 sm:$0xff]  }
  0xdc   :  { %2572 = vmatprep.subr.bf16.mxu0 %v5247_v54  ;;  %2859 = vmatprep.subr.bf16.mxu1 %v5250_v55  ;;  %v5337_v54 = vld [vmem:[#allocation2 + $0x564] ss:$16 sps:$4 sm:$0xff]   ;;  %v5340_v55 = vld [vmem:[#allocation2 + $0x56c] ss:$16 sps:$4 sm:$0xff]  }
  0xdf   :  { %2573 = vmatpush1.bf16.msra.mxu0 %v5245_v56  ;;  %2860 = vmatpush1.bf16.msra.mxu1 %v5248_v57  ;;  %v5335_v56 = vld [vmem:[#allocation2 + $0x560] ss:$16 sps:$4 sm:$0xff]   ;;  %v5338_v57 = vld [vmem:[#allocation2 + $0x568] ss:$16 sps:$4 sm:$0xff]  }
  0xe0   :  { %2574 = vmatprep.subr.bf16.mxu0 %v5253_v58  ;;  %2861 = vmatprep.subr.bf16.mxu1 %v5256_v59  ;;  %v5343_v58 = vld [vmem:[#allocation2 + $0x584] ss:$16 sps:$4 sm:$0xff]   ;;  %v5346_v59 = vld [vmem:[#allocation2 + $0x58c] ss:$16 sps:$4 sm:$0xff]  }
  0xe3   :  { %2575 = vmatpush1.bf16.msra.mxu0 %v5251_v60  ;;  %2862 = vmatpush1.bf16.msra.mxu1 %v5254_v61  ;;  %v5341_v60 = vld [vmem:[#allocation2 + $0x580] ss:$16 sps:$4 sm:$0xff]   ;;  %v5344_v61 = vld [vmem:[#allocation2 + $0x588] ss:$16 sps:$4 sm:$0xff]  }
  0xe4   :  { %2576 = vmatprep.subr.bf16.mxu0 %v5259_v62  ;;  %2863 = vmatprep.subr.bf16.mxu1 %v5262_v63  ;;  %v5349_v62 = vld [vmem:[#allocation2 + $0x5a4] ss:$16 sps:$4 sm:$0xff]   ;;  %v5352_v63 = vld [vmem:[#allocation2 + $0x5ac] ss:$16 sps:$4 sm:$0xff]  }
  0xe7   :  { %2577 = vmatpush1.bf16.msra.mxu0 %v5257_v0  ;;  %2864 = vmatpush1.bf16.msra.mxu1 %v5260_v1  ;;  %v5347_v0 = vld [vmem:[#allocation2 + $0x5a0] ss:$16 sps:$4 sm:$0xff]   ;;  %v5350_v1 = vld [vmem:[#allocation2 + $0x5a8] ss:$16 sps:$4 sm:$0xff]  }
  0xe8   :  { %2578 = vmatprep.subr.bf16.mxu0 %v5265_v2  ;;  %2865 = vmatprep.subr.bf16.mxu1 %v5268_v3  ;;  %v5355_v2 = vld [vmem:[#allocation2 + $0x5c4] ss:$16 sps:$4 sm:$0xff]   ;;  %v5358_v3 = vld [vmem:[#allocation2 + $0x5cc] ss:$16 sps:$4 sm:$0xff]  }
  0xeb   :  { %2579 = vmatpush1.bf16.msra.mxu0 %v5263_v4  ;;  %2866 = vmatpush1.bf16.msra.mxu1 %v5266_v5  ;;  %v5353_v4 = vld [vmem:[#allocation2 + $0x5c0] ss:$16 sps:$4 sm:$0xff]   ;;  %v5356_v5 = vld [vmem:[#allocation2 + $0x5c8] ss:$16 sps:$4 sm:$0xff]  }
  0xec   :  { %2589 = vmatprep.subr.bf16.mxu0 %v5271_v6  ;;  %2876 = vmatprep.subr.bf16.mxu1 %v5274_v8  ;;  %v5361_v6 = vld [vmem:[#allocation2 + $0x5e4] ss:$16 sps:$4 sm:$0xff]   ;;  %v5359_v8 = vld [vmem:[#allocation2 + $0x5e0] ss:$16 sps:$4 sm:$0xff]  }
  0xee   :  { %2581 = vmatmul.mubr.bf16.vlgmr.msra.gmra.mrb[0].mxu0 %v118_v11  ;;  %2868 = vmatmul.mubr.bf16.vlgmr.msra.gmra.mrb[0].mxu1 %v118_v11  ;;  %v107_v11 = vld [vmem:[%s6225_s0 + $0x20] sm:$0xff] }
  0xef   :  { %2590 = vmatpush1.bf16.msra.mxu0 %v5269_v9  ;;  %2877 = vmatpush1.bf16.msra.mxu1 %v5272_v10  ;;  %v5362_v9 = vld [vmem:[#allocation2 + $0x5e8] ss:$16 sps:$4 sm:$0xff]   ;;  %v5367_v10 = vld [vmem:[#allocation2 + $0x604] ss:$16 sps:$4 sm:$0xff]  }
  0xf0   :  { %2591 = vmatprep.subr.bf16.mxu0 %v5277_v12  ;;  %2878 = vmatprep.subr.bf16.mxu1 %v5280_v13  ;;  %v5370_v12 = vld [vmem:[#allocation2 + $0x60c] ss:$16 sps:$4 sm:$0xff]   ;;  %v5365_v13 = vld [vmem:[#allocation2 + $0x600] ss:$16 sps:$4 sm:$0xff]  }
  0xf1   :  { %2621 = vmatprep.mubr.bf16.mxu0 %v121_v15  ;;  %2908 = vmatprep.mubr.bf16.mxu1 %v121_v15  ;;  %v120_v15 = vpack.c.bf16 %v107_v11, %v107_v11  ;;  %v5460_v11 = vld [vmem:[#allocation2 + $0x7ec] ss:$16 sps:$4 sm:$0xff]  }
  0xf3   :  { %2592 = vmatpush1.bf16.msra.mxu0 %v5275_v16  ;;  %2879 = vmatpush1.bf16.msra.mxu1 %v5278_v17  ;;  %v110_v16 = vld [vmem:[%s6225_s0 + $0x38] sm:$0xff]  ;;  %v5373_v17 = vld [vmem:[#allocation2 + $0x624] ss:$16 sps:$4 sm:$0xff]  }
  0xf4   :  { %2593 = vmatprep.subr.bf16.mxu0 %v5283_v18  ;;  %2880 = vmatprep.subr.bf16.mxu1 %v5286_v19  ;;  %v5376_v18 = vld [vmem:[#allocation2 + $0x62c] ss:$16 sps:$4 sm:$0xff]   ;;  %v123_v19 = vpack.c.bf16 %v110_v16, %v110_v16 }
  0xf5   :  { %v5466_v16 = vld [vmem:[#allocation2 + $0x80c] ss:$16 sps:$4 sm:$0xff]  }
  0xf7   :  { %2594 = vmatpush1.bf16.msra.mxu0 %v5281_v20  ;;  %2881 = vmatpush1.bf16.msra.mxu1 %v5284_v21  ;;  %v5371_v20 = vld [vmem:[#allocation2 + $0x620] ss:$16 sps:$4 sm:$0xff]   ;;  %v5374_v21 = vld [vmem:[#allocation2 + $0x628] ss:$16 sps:$4 sm:$0xff]  }
  0xf8   :  { %2595 = vmatprep.subr.bf16.mxu0 %v5289_v22  ;;  %2882 = vmatprep.subr.bf16.mxu1 %v5292_v23  ;;  %v5379_v22 = vld [vmem:[#allocation2 + $0x644] ss:$16 sps:$4 sm:$0xff]   ;;  %v5382_v23 = vld [vmem:[#allocation2 + $0x64c] ss:$16 sps:$4 sm:$0xff]  }
  0xfb   :  { %2596 = vmatpush1.bf16.msra.mxu0 %v5287_v24  ;;  %2883 = vmatpush1.bf16.msra.mxu1 %v5290_v25  ;;  %v5377_v24 = vld [vmem:[#allocation2 + $0x640] ss:$16 sps:$4 sm:$0xff]   ;;  %v5380_v25 = vld [vmem:[#allocation2 + $0x648] ss:$16 sps:$4 sm:$0xff]  }
  0xfc   :  { %2597 = vmatprep.subr.bf16.mxu0 %v5295_v26  ;;  %2884 = vmatprep.subr.bf16.mxu1 %v5298_v27  ;;  %v5385_v26 = vld [vmem:[#allocation2 + $0x664] ss:$16 sps:$4 sm:$0xff]   ;;  %v5388_v27 = vld [vmem:[#allocation2 + $0x66c] ss:$16 sps:$4 sm:$0xff]  }
  0xff   :  { %2598 = vmatpush1.bf16.msra.mxu0 %v5293_v28  ;;  %2885 = vmatpush1.bf16.msra.mxu1 %v5296_v29  ;;  %v5383_v28 = vld [vmem:[#allocation2 + $0x660] ss:$16 sps:$4 sm:$0xff]   ;;  %v5386_v29 = vld [vmem:[#allocation2 + $0x668] ss:$16 sps:$4 sm:$0xff]  }
 0x100   :  { %2599 = vmatprep.subr.bf16.mxu0 %v5301_v30  ;;  %2886 = vmatprep.subr.bf16.mxu1 %v5304_v31  ;;  %v5391_v30 = vld [vmem:[#allocation2 + $0x684] ss:$16 sps:$4 sm:$0xff]   ;;  %v5394_v31 = vld [vmem:[#allocation2 + $0x68c] ss:$16 sps:$4 sm:$0xff]  }
 0x103   :  { %2600 = vmatpush1.bf16.msra.mxu0 %v5299_v32  ;;  %2887 = vmatpush1.bf16.msra.mxu1 %v5302_v33  ;;  %v5389_v32 = vld [vmem:[#allocation2 + $0x680] ss:$16 sps:$4 sm:$0xff]   ;;  %v5392_v33 = vld [vmem:[#allocation2 + $0x688] ss:$16 sps:$4 sm:$0xff]  }
 0x104   :  { %2601 = vmatprep.subr.bf16.mxu0 %v5307_v34  ;;  %2888 = vmatprep.subr.bf16.mxu1 %v5310_v35  ;;  %v5397_v34 = vld [vmem:[#allocation2 + $0x6a4] ss:$16 sps:$4 sm:$0xff]   ;;  %v5400_v35 = vld [vmem:[#allocation2 + $0x6ac] ss:$16 sps:$4 sm:$0xff]  }
 0x107   :  { %2602 = vmatpush1.bf16.msra.mxu0 %v5305_v36  ;;  %2889 = vmatpush1.bf16.msra.mxu1 %v5308_v37  ;;  %v5395_v36 = vld [vmem:[#allocation2 + $0x6a0] ss:$16 sps:$4 sm:$0xff]   ;;  %v5398_v37 = vld [vmem:[#allocation2 + $0x6a8] ss:$16 sps:$4 sm:$0xff]  }
 0x108   :  { %2603 = vmatprep.subr.bf16.mxu0 %v5313_v38  ;;  %2890 = vmatprep.subr.bf16.mxu1 %v5316_v39  ;;  %v5403_v38 = vld [vmem:[#allocation2 + $0x6c4] ss:$16 sps:$4 sm:$0xff]   ;;  %v5406_v39 = vld [vmem:[#allocation2 + $0x6cc] ss:$16 sps:$4 sm:$0xff]  }
 0x10b   :  { %2604 = vmatpush1.bf16.msra.mxu0 %v5311_v40  ;;  %2891 = vmatpush1.bf16.msra.mxu1 %v5314_v41  ;;  %v5401_v40 = vld [vmem:[#allocation2 + $0x6c0] ss:$16 sps:$4 sm:$0xff]   ;;  %v5404_v41 = vld [vmem:[#allocation2 + $0x6c8] ss:$16 sps:$4 sm:$0xff]  }
 0x10c   :  { %2605 = vmatprep.subr.bf16.mxu0 %v5319_v42  ;;  %2892 = vmatprep.subr.bf16.mxu1 %v5322_v43  ;;  %v5409_v42 = vld [vmem:[#allocation2 + $0x6e4] ss:$16 sps:$4 sm:$0xff]   ;;  %v5412_v43 = vld [vmem:[#allocation2 + $0x6ec] ss:$16 sps:$4 sm:$0xff]  }
 0x10f   :  { %2606 = vmatpush1.bf16.msra.mxu0 %v5317_v44  ;;  %2893 = vmatpush1.bf16.msra.mxu1 %v5320_v45  ;;  %v5407_v44 = vld [vmem:[#allocation2 + $0x6e0] ss:$16 sps:$4 sm:$0xff]   ;;  %v5410_v45 = vld [vmem:[#allocation2 + $0x6e8] ss:$16 sps:$4 sm:$0xff]  }
 0x110   :  { %2607 = vmatprep.subr.bf16.mxu0 %v5325_v46  ;;  %2894 = vmatprep.subr.bf16.mxu1 %v5328_v47  ;;  %v5415_v46 = vld [vmem:[#allocation2 + $0x704] ss:$16 sps:$4 sm:$0xff]   ;;  %v5418_v47 = vld [vmem:[#allocation2 + $0x70c] ss:$16 sps:$4 sm:$0xff]  }
 0x113   :  { %2608 = vmatpush1.bf16.msra.mxu0 %v5323_v48  ;;  %2895 = vmatpush1.bf16.msra.mxu1 %v5326_v49  ;;  %v5413_v48 = vld [vmem:[#allocation2 + $0x700] ss:$16 sps:$4 sm:$0xff]   ;;  %v5416_v49 = vld [vmem:[#allocation2 + $0x708] ss:$16 sps:$4 sm:$0xff]  }
 0x114   :  { %2609 = vmatprep.subr.bf16.mxu0 %v5331_v50  ;;  %2896 = vmatprep.subr.bf16.mxu1 %v5334_v51  ;;  %v5421_v50 = vld [vmem:[#allocation2 + $0x724] ss:$16 sps:$4 sm:$0xff]   ;;  %v5424_v51 = vld [vmem:[#allocation2 + $0x72c] ss:$16 sps:$4 sm:$0xff]  }
 0x117   :  { %2610 = vmatpush1.bf16.msra.mxu0 %v5329_v52  ;;  %2897 = vmatpush1.bf16.msra.mxu1 %v5332_v53  ;;  %v5419_v52 = vld [vmem:[#allocation2 + $0x720] ss:$16 sps:$4 sm:$0xff]   ;;  %v5422_v53 = vld [vmem:[#allocation2 + $0x728] ss:$16 sps:$4 sm:$0xff]  }
 0x118   :  { %2611 = vmatprep.subr.bf16.mxu0 %v5337_v54  ;;  %2898 = vmatprep.subr.bf16.mxu1 %v5340_v55  ;;  %v5427_v54 = vld [vmem:[#allocation2 + $0x744] ss:$16 sps:$4 sm:$0xff]   ;;  %v5430_v55 = vld [vmem:[#allocation2 + $0x74c] ss:$16 sps:$4 sm:$0xff]  }
 0x11b   :  { %2612 = vmatpush1.bf16.msra.mxu0 %v5335_v56  ;;  %2899 = vmatpush1.bf16.msra.mxu1 %v5338_v57  ;;  %v5425_v56 = vld [vmem:[#allocation2 + $0x740] ss:$16 sps:$4 sm:$0xff]   ;;  %v5428_v57 = vld [vmem:[#allocation2 + $0x748] ss:$16 sps:$4 sm:$0xff]  }
 0x11c   :  { %2613 = vmatprep.subr.bf16.mxu0 %v5343_v58  ;;  %2900 = vmatprep.subr.bf16.mxu1 %v5346_v59  ;;  %v5433_v58 = vld [vmem:[#allocation2 + $0x764] ss:$16 sps:$4 sm:$0xff]   ;;  %v5436_v59 = vld [vmem:[#allocation2 + $0x76c] ss:$16 sps:$4 sm:$0xff]  }
 0x11f   :  { %2614 = vmatpush1.bf16.msra.mxu0 %v5341_v60  ;;  %2901 = vmatpush1.bf16.msra.mxu1 %v5344_v61  ;;  %v5431_v60 = vld [vmem:[#allocation2 + $0x760] ss:$16 sps:$4 sm:$0xff]   ;;  %v5434_v61 = vld [vmem:[#allocation2 + $0x768] ss:$16 sps:$4 sm:$0xff]  }
 0x120   :  { %2615 = vmatprep.subr.bf16.mxu0 %v5349_v62  ;;  %2902 = vmatprep.subr.bf16.mxu1 %v5352_v63  ;;  %v5439_v62 = vld [vmem:[#allocation2 + $0x784] ss:$16 sps:$4 sm:$0xff]   ;;  %v5442_v63 = vld [vmem:[#allocation2 + $0x78c] ss:$16 sps:$4 sm:$0xff]  }
 0x123   :  { %2616 = vmatpush1.bf16.msra.mxu0 %v5347_v0  ;;  %2903 = vmatpush1.bf16.msra.mxu1 %v5350_v1  ;;  %v5437_v0 = vld [vmem:[#allocation2 + $0x780] ss:$16 sps:$4 sm:$0xff]   ;;  %v5440_v1 = vld [vmem:[#allocation2 + $0x788] ss:$16 sps:$4 sm:$0xff]  }
 0x124   :  { %2617 = vmatprep.subr.bf16.mxu0 %v5355_v2  ;;  %2904 = vmatprep.subr.bf16.mxu1 %v5358_v3  ;;  %v5445_v2 = vld [vmem:[#allocation2 + $0x7a4] ss:$16 sps:$4 sm:$0xff]   ;;  %v5448_v3 = vld [vmem:[#allocation2 + $0x7ac] ss:$16 sps:$4 sm:$0xff]  }
 0x127   :  { %2618 = vmatpush1.bf16.msra.mxu0 %v5353_v4  ;;  %2905 = vmatpush1.bf16.msra.mxu1 %v5356_v5  ;;  %v5443_v4 = vld [vmem:[#allocation2 + $0x7a0] ss:$16 sps:$4 sm:$0xff]   ;;  %v5446_v5 = vld [vmem:[#allocation2 + $0x7a8] ss:$16 sps:$4 sm:$0xff]  }
 0x128   :  { %2619 = vmatprep.subr.bf16.mxu0 %v5361_v6  ;;  %2906 = vmatprep.subr.bf16.mxu1 %v5364_v7  ;;  %v5451_v6 = vld [vmem:[#allocation2 + $0x7c4] ss:$16 sps:$4 sm:$0xff]   ;;  %v5454_v7 = vld [vmem:[#allocation2 + $0x7cc] ss:$16 sps:$4 sm:$0xff]  }
 0x12b   :  { %2620 = vmatpush1.bf16.msra.mxu0 %v5359_v8  ;;  %2907 = vmatpush1.bf16.msra.mxu1 %v5362_v9  ;;  %v5449_v8 = vld [vmem:[#allocation2 + $0x7c0] ss:$16 sps:$4 sm:$0xff]   ;;  %v5452_v9 = vld [vmem:[#allocation2 + $0x7c8] ss:$16 sps:$4 sm:$0xff]  }
 0x12c   :  { %2630 = vmatprep.subr.bf16.mxu0 %v5367_v10  ;;  %2917 = vmatprep.subr.bf16.mxu1 %v5370_v12  ;;  %v5457_v10 = vld [vmem:[#allocation2 + $0x7e4] ss:$16 sps:$4 sm:$0xff]   ;;  %v5455_v12 = vld [vmem:[#allocation2 + $0x7e0] ss:$16 sps:$4 sm:$0xff]  }
 0x12e   :  { %2622 = vmatmul.mubr.bf16.vlgmr.msra.gmra.mrb[0].mxu0 %v120_v15  ;;  %2909 = vmatmul.mubr.bf16.vlgmr.msra.gmra.mrb[0].mxu1 %v120_v15  ;;  %v5463_v15 = vld [vmem:[#allocation2 + $0x804] ss:$16 sps:$4 sm:$0xff]  }
 0x12f   :  { %2631 = vmatpush1.bf16.msra.mxu0 %v5365_v13  ;;  %2918 = vmatpush1.bf16.msra.mxu1 %v5368_v14  ;;  %v5458_v13 = vld [vmem:[#allocation2 + $0x7e8] ss:$16 sps:$4 sm:$0xff]   ;;  %v109_v14 = vld [vmem:[%s6225_s0 + $0x30] sm:$0xff] }
 0x130   :  { %2632 = vmatprep.subr.bf16.mxu0 %v5373_v17  ;;  %2919 = vmatprep.subr.bf16.mxu1 %v5376_v18  ;;  %v122_v17 = vpack.c.bf16 %v109_v14, %v109_v14  ;;  %v112_v18 = vld [vmem:[%s6225_s0 + $0x48] sm:$0xff]  ;;  %v5553_v14 = vld [vmem:[#allocation2 + $0x9e4] ss:$16 sps:$4 sm:$0xff]  }
 0x131   :  { %2662 = vmatprep.mubr.bf16.mxu0 %v123_v19  ;;  %2949 = vmatprep.mubr.bf16.mxu1 %v123_v19  ;;  %v5461_v19 = vld [vmem:[#allocation2 + $0x800] ss:$16 sps:$4 sm:$0xff]  }
 0x133   :  { %2633 = vmatpush1.bf16.msra.mxu0 %v5371_v20  ;;  %2920 = vmatpush1.bf16.msra.mxu1 %v5374_v21  ;;  %v5464_v20 = vld [vmem:[#allocation2 + $0x808] ss:$16 sps:$4 sm:$0xff]   ;;  %v5469_v21 = vld [vmem:[#allocation2 + $0x824] ss:$16 sps:$4 sm:$0xff]  }
 0x134   :  { %2634 = vmatprep.subr.bf16.mxu0 %v5379_v22  ;;  %2921 = vmatprep.subr.bf16.mxu1 %v5382_v23  ;;  %v5472_v22 = vld [vmem:[#allocation2 + $0x82c] ss:$16 sps:$4 sm:$0xff]   ;;  %v125_v23 = vpack.c.bf16 %v112_v18, %v112_v18  ;;  %v5559_v18 = vld [vmem:[#allocation2 + $0xa04] ss:$16 sps:$4 sm:$0xff]  }
 0x137   :  { %2635 = vmatpush1.bf16.msra.mxu0 %v5377_v24  ;;  %2922 = vmatpush1.bf16.msra.mxu1 %v5380_v25  ;;  %v5467_v24 = vld [vmem:[#allocation2 + $0x820] ss:$16 sps:$4 sm:$0xff]   ;;  %v5470_v25 = vld [vmem:[#allocation2 + $0x828] ss:$16 sps:$4 sm:$0xff]  }
 0x138   :  { %2636 = vmatprep.subr.bf16.mxu0 %v5385_v26  ;;  %2923 = vmatprep.subr.bf16.mxu1 %v5388_v27  ;;  %v5475_v26 = vld [vmem:[#allocation2 + $0x844] ss:$16 sps:$4 sm:$0xff]   ;;  %v5478_v27 = vld [vmem:[#allocation2 + $0x84c] ss:$16 sps:$4 sm:$0xff]  }
 0x13b   :  { %2637 = vmatpush1.bf16.msra.mxu0 %v5383_v28  ;;  %2924 = vmatpush1.bf16.msra.mxu1 %v5386_v29  ;;  %v5473_v28 = vld [vmem:[#allocation2 + $0x840] ss:$16 sps:$4 sm:$0xff]   ;;  %v5476_v29 = vld [vmem:[#allocation2 + $0x848] ss:$16 sps:$4 sm:$0xff]  }
 0x13c   :  { %2638 = vmatprep.subr.bf16.mxu0 %v5391_v30  ;;  %2925 = vmatprep.subr.bf16.mxu1 %v5394_v31  ;;  %v5481_v30 = vld [vmem:[#allocation2 + $0x864] ss:$16 sps:$4 sm:$0xff]   ;;  %v5484_v31 = vld [vmem:[#allocation2 + $0x86c] ss:$16 sps:$4 sm:$0xff]  }
 0x13f   :  { %2639 = vmatpush1.bf16.msra.mxu0 %v5389_v32  ;;  %2926 = vmatpush1.bf16.msra.mxu1 %v5392_v33  ;;  %v5479_v32 = vld [vmem:[#allocation2 + $0x860] ss:$16 sps:$4 sm:$0xff]   ;;  %v5482_v33 = vld [vmem:[#allocation2 + $0x868] ss:$16 sps:$4 sm:$0xff]  }
 0x140   :  { %2640 = vmatprep.subr.bf16.mxu0 %v5397_v34  ;;  %2927 = vmatprep.subr.bf16.mxu1 %v5400_v35  ;;  %v5487_v34 = vld [vmem:[#allocation2 + $0x884] ss:$16 sps:$4 sm:$0xff]   ;;  %v5490_v35 = vld [vmem:[#allocation2 + $0x88c] ss:$16 sps:$4 sm:$0xff]  }
 0x143   :  { %2641 = vmatpush1.bf16.msra.mxu0 %v5395_v36  ;;  %2928 = vmatpush1.bf16.msra.mxu1 %v5398_v37  ;;  %v5485_v36 = vld [vmem:[#allocation2 + $0x880] ss:$16 sps:$4 sm:$0xff]   ;;  %v5488_v37 = vld [vmem:[#allocation2 + $0x888] ss:$16 sps:$4 sm:$0xff]  }
 0x144   :  { %2642 = vmatprep.subr.bf16.mxu0 %v5403_v38  ;;  %2929 = vmatprep.subr.bf16.mxu1 %v5406_v39  ;;  %v5493_v38 = vld [vmem:[#allocation2 + $0x8a4] ss:$16 sps:$4 sm:$0xff]   ;;  %v5496_v39 = vld [vmem:[#allocation2 + $0x8ac] ss:$16 sps:$4 sm:$0xff]  }
 0x147   :  { %2643 = vmatpush1.bf16.msra.mxu0 %v5401_v40  ;;  %2930 = vmatpush1.bf16.msra.mxu1 %v5404_v41  ;;  %v5491_v40 = vld [vmem:[#allocation2 + $0x8a0] ss:$16 sps:$4 sm:$0xff]   ;;  %v5494_v41 = vld [vmem:[#allocation2 + $0x8a8] ss:$16 sps:$4 sm:$0xff]  }
 0x148   :  { %2644 = vmatprep.subr.bf16.mxu0 %v5409_v42  ;;  %2931 = vmatprep.subr.bf16.mxu1 %v5412_v43  ;;  %v5499_v42 = vld [vmem:[#allocation2 + $0x8c4] ss:$16 sps:$4 sm:$0xff]   ;;  %v5502_v43 = vld [vmem:[#allocation2 + $0x8cc] ss:$16 sps:$4 sm:$0xff]  }
 0x14b   :  { %2645 = vmatpush1.bf16.msra.mxu0 %v5407_v44  ;;  %2932 = vmatpush1.bf16.msra.mxu1 %v5410_v45  ;;  %v5497_v44 = vld [vmem:[#allocation2 + $0x8c0] ss:$16 sps:$4 sm:$0xff]   ;;  %v5500_v45 = vld [vmem:[#allocation2 + $0x8c8] ss:$16 sps:$4 sm:$0xff]  }
 0x14c   :  { %2646 = vmatprep.subr.bf16.mxu0 %v5415_v46  ;;  %2933 = vmatprep.subr.bf16.mxu1 %v5418_v47  ;;  %v5505_v46 = vld [vmem:[#allocation2 + $0x8e4] ss:$16 sps:$4 sm:$0xff]   ;;  %v5508_v47 = vld [vmem:[#allocation2 + $0x8ec] ss:$16 sps:$4 sm:$0xff]  }
 0x14f   :  { %2647 = vmatpush1.bf16.msra.mxu0 %v5413_v48  ;;  %2934 = vmatpush1.bf16.msra.mxu1 %v5416_v49  ;;  %v5503_v48 = vld [vmem:[#allocation2 + $0x8e0] ss:$16 sps:$4 sm:$0xff]   ;;  %v5506_v49 = vld [vmem:[#allocation2 + $0x8e8] ss:$16 sps:$4 sm:$0xff]  }
 0x150   :  { %2648 = vmatprep.subr.bf16.mxu0 %v5421_v50  ;;  %2935 = vmatprep.subr.bf16.mxu1 %v5424_v51  ;;  %v5511_v50 = vld [vmem:[#allocation2 + $0x904] ss:$16 sps:$4 sm:$0xff]   ;;  %v5514_v51 = vld [vmem:[#allocation2 + $0x90c] ss:$16 sps:$4 sm:$0xff]  }
 0x153   :  { %2649 = vmatpush1.bf16.msra.mxu0 %v5419_v52  ;;  %2936 = vmatpush1.bf16.msra.mxu1 %v5422_v53  ;;  %v5509_v52 = vld [vmem:[#allocation2 + $0x900] ss:$16 sps:$4 sm:$0xff]   ;;  %v5512_v53 = vld [vmem:[#allocation2 + $0x908] ss:$16 sps:$4 sm:$0xff]  }
 0x154   :  { %2650 = vmatprep.subr.bf16.mxu0 %v5427_v54  ;;  %2937 = vmatprep.subr.bf16.mxu1 %v5430_v55  ;;  %v5517_v54 = vld [vmem:[#allocation2 + $0x924] ss:$16 sps:$4 sm:$0xff]   ;;  %v5520_v55 = vld [vmem:[#allocation2 + $0x92c] ss:$16 sps:$4 sm:$0xff]  }
 0x157   :  { %2651 = vmatpush1.bf16.msra.mxu0 %v5425_v56  ;;  %2938 = vmatpush1.bf16.msra.mxu1 %v5428_v57  ;;  %v5515_v56 = vld [vmem:[#allocation2 + $0x920] ss:$16 sps:$4 sm:$0xff]   ;;  %v5518_v57 = vld [vmem:[#allocation2 + $0x928] ss:$16 sps:$4 sm:$0xff]  }
 0x158   :  { %2652 = vmatprep.subr.bf16.mxu0 %v5433_v58  ;;  %2939 = vmatprep.subr.bf16.mxu1 %v5436_v59  ;;  %v5523_v58 = vld [vmem:[#allocation2 + $0x944] ss:$16 sps:$4 sm:$0xff]   ;;  %v5526_v59 = vld [vmem:[#allocation2 + $0x94c] ss:$16 sps:$4 sm:$0xff]  }
 0x15b   :  { %2653 = vmatpush1.bf16.msra.mxu0 %v5431_v60  ;;  %2940 = vmatpush1.bf16.msra.mxu1 %v5434_v61  ;;  %v5521_v60 = vld [vmem:[#allocation2 + $0x940] ss:$16 sps:$4 sm:$0xff]   ;;  %v5524_v61 = vld [vmem:[#allocation2 + $0x948] ss:$16 sps:$4 sm:$0xff]  }
 0x15c   :  { %2654 = vmatprep.subr.bf16.mxu0 %v5439_v62  ;;  %2941 = vmatprep.subr.bf16.mxu1 %v5442_v63  ;;  %v5529_v62 = vld [vmem:[#allocation2 + $0x964] ss:$16 sps:$4 sm:$0xff]   ;;  %v5532_v63 = vld [vmem:[#allocation2 + $0x96c] ss:$16 sps:$4 sm:$0xff]  }
 0x15f   :  { %2655 = vmatpush1.bf16.msra.mxu0 %v5437_v0  ;;  %2942 = vmatpush1.bf16.msra.mxu1 %v5440_v1  ;;  %v5527_v0 = vld [vmem:[#allocation2 + $0x960] ss:$16 sps:$4 sm:$0xff]   ;;  %v5530_v1 = vld [vmem:[#allocation2 + $0x968] ss:$16 sps:$4 sm:$0xff]  }
 0x160   :  { %2656 = vmatprep.subr.bf16.mxu0 %v5445_v2  ;;  %2943 = vmatprep.subr.bf16.mxu1 %v5448_v3  ;;  %v5535_v2 = vld [vmem:[#allocation2 + $0x984] ss:$16 sps:$4 sm:$0xff]   ;;  %v5538_v3 = vld [vmem:[#allocation2 + $0x98c] ss:$16 sps:$4 sm:$0xff]  }
 0x163   :  { %2657 = vmatpush1.bf16.msra.mxu0 %v5443_v4  ;;  %2944 = vmatpush1.bf16.msra.mxu1 %v5446_v5  ;;  %v5533_v4 = vld [vmem:[#allocation2 + $0x980] ss:$16 sps:$4 sm:$0xff]   ;;  %v5536_v5 = vld [vmem:[#allocation2 + $0x988] ss:$16 sps:$4 sm:$0xff]  }
 0x164   :  { %2658 = vmatprep.subr.bf16.mxu0 %v5451_v6  ;;  %2945 = vmatprep.subr.bf16.mxu1 %v5454_v7  ;;  %v5541_v6 = vld [vmem:[#allocation2 + $0x9a4] ss:$16 sps:$4 sm:$0xff]   ;;  %v5544_v7 = vld [vmem:[#allocation2 + $0x9ac] ss:$16 sps:$4 sm:$0xff]  }
 0x167   :  { %2659 = vmatpush1.bf16.msra.mxu0 %v5449_v8  ;;  %2946 = vmatpush1.bf16.msra.mxu1 %v5452_v9  ;;  %v5539_v8 = vld [vmem:[#allocation2 + $0x9a0] ss:$16 sps:$4 sm:$0xff]   ;;  %v5542_v9 = vld [vmem:[#allocation2 + $0x9a8] ss:$16 sps:$4 sm:$0xff]  }
 0x168   :  { %2660 = vmatprep.subr.bf16.mxu0 %v5457_v10  ;;  %2947 = vmatprep.subr.bf16.mxu1 %v5460_v11  ;;  %v5547_v10 = vld [vmem:[#allocation2 + $0x9c4] ss:$16 sps:$4 sm:$0xff]   ;;  %v5550_v11 = vld [vmem:[#allocation2 + $0x9cc] ss:$16 sps:$4 sm:$0xff]  }
 0x16b   :  { %2661 = vmatpush1.bf16.msra.mxu0 %v5455_v12  ;;  %2948 = vmatpush1.bf16.msra.mxu1 %v5458_v13  ;;  %v5545_v12 = vld [vmem:[#allocation2 + $0x9c0] ss:$16 sps:$4 sm:$0xff]   ;;  %v5548_v13 = vld [vmem:[#allocation2 + $0x9c8] ss:$16 sps:$4 sm:$0xff]  }
 0x16c   :  { %2671 = vmatprep.subr.bf16.mxu0 %v5463_v15  ;;  %2958 = vmatprep.subr.bf16.mxu1 %v5466_v16  ;;  %v5556_v15 = vld [vmem:[#allocation2 + $0x9ec] ss:$16 sps:$4 sm:$0xff]   ;;  %v5551_v16 = vld [vmem:[#allocation2 + $0x9e0] ss:$16 sps:$4 sm:$0xff]  }
 0x16e   :  { %2663 = vmatmul.mubr.bf16.vlgmr.msra.gmra.mrb[0].mxu0 %v122_v17  ;;  %2950 = vmatmul.mubr.bf16.vlgmr.msra.gmra.mrb[0].mxu1 %v122_v17  ;;  %v5554_v17 = vld [vmem:[#allocation2 + $0x9e8] ss:$16 sps:$4 sm:$0xff]  }
 0x16f   :  { %2672 = vmatpush1.bf16.msra.mxu0 %v5461_v19  ;;  %2959 = vmatpush1.bf16.msra.mxu1 %v5464_v20  ;;  %v111_v19 = vld [vmem:[%s6225_s0 + $0x40] sm:$0xff]  ;;  %v5562_v20 = vld [vmem:[#allocation2 + $0xa0c] ss:$16 sps:$4 sm:$0xff]  }
 0x170   :  { %2673 = vmatprep.subr.bf16.mxu0 %v5469_v21  ;;  %2960 = vmatprep.subr.bf16.mxu1 %v5472_v22  ;;  %v114_v21 = vld [vmem:[%s6225_s0 + $0x58] sm:$0xff]  ;;  %v124_v22 = vpack.c.bf16 %v111_v19, %v111_v19 }
 0x171   :  { %2703 = vmatprep.mubr.bf16.mxu0 %v125_v23  ;;  %2990 = vmatprep.mubr.bf16.mxu1 %v125_v23  ;;  %v5557_v23 = vld [vmem:[#allocation2 + $0xa00] ss:$16 sps:$4 sm:$0xff]   ;;  %v5652_v19 = vld [vmem:[#allocation2 + $0xbec] ss:$16 sps:$4 sm:$0xff]  }
 0x173   :  { %2674 = vmatpush1.bf16.msra.mxu0 %v5467_v24  ;;  %2961 = vmatpush1.bf16.msra.mxu1 %v5470_v25  ;;  %v5560_v24 = vld [vmem:[#allocation2 + $0xa08] ss:$16 sps:$4 sm:$0xff]   ;;  %v5565_v25 = vld [vmem:[#allocation2 + $0xa24] ss:$16 sps:$4 sm:$0xff]  }
 0x174   :  { %2675 = vmatprep.subr.bf16.mxu0 %v5475_v26  ;;  %2962 = vmatprep.subr.bf16.mxu1 %v5478_v27  ;;  %v5568_v26 = vld [vmem:[#allocation2 + $0xa2c] ss:$16 sps:$4 sm:$0xff]   ;;  %v5563_v27 = vld [vmem:[#allocation2 + $0xa20] ss:$16 sps:$4 sm:$0xff]  }
 0x177   :  { %2676 = vmatpush1.bf16.msra.mxu0 %v5473_v28  ;;  %2963 = vmatpush1.bf16.msra.mxu1 %v5476_v29  ;;  %v5566_v28 = vld [vmem:[#allocation2 + $0xa28] ss:$16 sps:$4 sm:$0xff]   ;;  %v127_v29 = vpack.c.bf16 %v114_v21, %v114_v21 }
 0x178   :  { %2677 = vmatprep.subr.bf16.mxu0 %v5481_v30  ;;  %2964 = vmatprep.subr.bf16.mxu1 %v5484_v31  ;;  %v5571_v30 = vld [vmem:[#allocation2 + $0xa44] ss:$16 sps:$4 sm:$0xff]   ;;  %v5574_v31 = vld [vmem:[#allocation2 + $0xa4c] ss:$16 sps:$4 sm:$0xff]   ;;  %v5650_v21 = vld [vmem:[#allocation2 + $0xbe8] ss:$16 sps:$4 sm:$0xff]  }
 0x17b   :  { %2678 = vmatpush1.bf16.msra.mxu0 %v5479_v32  ;;  %2965 = vmatpush1.bf16.msra.mxu1 %v5482_v33  ;;  %v5569_v32 = vld [vmem:[#allocation2 + $0xa40] ss:$16 sps:$4 sm:$0xff]   ;;  %v5572_v33 = vld [vmem:[#allocation2 + $0xa48] ss:$16 sps:$4 sm:$0xff]  }
 0x17c   :  { %2679 = vmatprep.subr.bf16.mxu0 %v5487_v34  ;;  %2966 = vmatprep.subr.bf16.mxu1 %v5490_v35  ;;  %v5577_v34 = vld [vmem:[#allocation2 + $0xa64] ss:$16 sps:$4 sm:$0xff]   ;;  %v5580_v35 = vld [vmem:[#allocation2 + $0xa6c] ss:$16 sps:$4 sm:$0xff]  }
 0x17f   :  { %2680 = vmatpush1.bf16.msra.mxu0 %v5485_v36  ;;  %2967 = vmatpush1.bf16.msra.mxu1 %v5488_v37  ;;  %v5575_v36 = vld [vmem:[#allocation2 + $0xa60] ss:$16 sps:$4 sm:$0xff]   ;;  %v5578_v37 = vld [vmem:[#allocation2 + $0xa68] ss:$16 sps:$4 sm:$0xff]  }
 0x180   :  { %2681 = vmatprep.subr.bf16.mxu0 %v5493_v38  ;;  %2968 = vmatprep.subr.bf16.mxu1 %v5496_v39  ;;  %v5583_v38 = vld [vmem:[#allocation2 + $0xa84] ss:$16 sps:$4 sm:$0xff]   ;;  %v5586_v39 = vld [vmem:[#allocation2 + $0xa8c] ss:$16 sps:$4 sm:$0xff]  }
 0x183   :  { %2682 = vmatpush1.bf16.msra.mxu0 %v5491_v40  ;;  %2969 = vmatpush1.bf16.msra.mxu1 %v5494_v41  ;;  %v5581_v40 = vld [vmem:[#allocation2 + $0xa80] ss:$16 sps:$4 sm:$0xff]   ;;  %v5584_v41 = vld [vmem:[#allocation2 + $0xa88] ss:$16 sps:$4 sm:$0xff]  }
 0x184   :  { %2683 = vmatprep.subr.bf16.mxu0 %v5499_v42  ;;  %2970 = vmatprep.subr.bf16.mxu1 %v5502_v43  ;;  %v5589_v42 = vld [vmem:[#allocation2 + $0xaa4] ss:$16 sps:$4 sm:$0xff]   ;;  %v5592_v43 = vld [vmem:[#allocation2 + $0xaac] ss:$16 sps:$4 sm:$0xff]  }
 0x187   :  { %2684 = vmatpush1.bf16.msra.mxu0 %v5497_v44  ;;  %2971 = vmatpush1.bf16.msra.mxu1 %v5500_v45  ;;  %v5587_v44 = vld [vmem:[#allocation2 + $0xaa0] ss:$16 sps:$4 sm:$0xff]   ;;  %v5590_v45 = vld [vmem:[#allocation2 + $0xaa8] ss:$16 sps:$4 sm:$0xff]  }
 0x188   :  { %2685 = vmatprep.subr.bf16.mxu0 %v5505_v46  ;;  %2972 = vmatprep.subr.bf16.mxu1 %v5508_v47  ;;  %v5595_v46 = vld [vmem:[#allocation2 + $0xac4] ss:$16 sps:$4 sm:$0xff]   ;;  %v5598_v47 = vld [vmem:[#allocation2 + $0xacc] ss:$16 sps:$4 sm:$0xff]  }
 0x18b   :  { %2686 = vmatpush1.bf16.msra.mxu0 %v5503_v48  ;;  %2973 = vmatpush1.bf16.msra.mxu1 %v5506_v49  ;;  %v5593_v48 = vld [vmem:[#allocation2 + $0xac0] ss:$16 sps:$4 sm:$0xff]   ;;  %v5596_v49 = vld [vmem:[#allocation2 + $0xac8] ss:$16 sps:$4 sm:$0xff]  }
 0x18c   :  { %2687 = vmatprep.subr.bf16.mxu0 %v5511_v50  ;;  %2974 = vmatprep.subr.bf16.mxu1 %v5514_v51  ;;  %v5601_v50 = vld [vmem:[#allocation2 + $0xae4] ss:$16 sps:$4 sm:$0xff]   ;;  %v5604_v51 = vld [vmem:[#allocation2 + $0xaec] ss:$16 sps:$4 sm:$0xff]  }
 0x18f   :  { %2688 = vmatpush1.bf16.msra.mxu0 %v5509_v52  ;;  %2975 = vmatpush1.bf16.msra.mxu1 %v5512_v53  ;;  %v5599_v52 = vld [vmem:[#allocation2 + $0xae0] ss:$16 sps:$4 sm:$0xff]   ;;  %v5602_v53 = vld [vmem:[#allocation2 + $0xae8] ss:$16 sps:$4 sm:$0xff]  }
 0x190   :  { %2689 = vmatprep.subr.bf16.mxu0 %v5517_v54  ;;  %2976 = vmatprep.subr.bf16.mxu1 %v5520_v55  ;;  %v5607_v54 = vld [vmem:[#allocation2 + $0xb04] ss:$16 sps:$4 sm:$0xff]   ;;  %v5610_v55 = vld [vmem:[#allocation2 + $0xb0c] ss:$16 sps:$4 sm:$0xff]  }
 0x193   :  { %2690 = vmatpush1.bf16.msra.mxu0 %v5515_v56  ;;  %2977 = vmatpush1.bf16.msra.mxu1 %v5518_v57  ;;  %v5605_v56 = vld [vmem:[#allocation2 + $0xb00] ss:$16 sps:$4 sm:$0xff]   ;;  %v5608_v57 = vld [vmem:[#allocation2 + $0xb08] ss:$16 sps:$4 sm:$0xff]  }
 0x194   :  { %2691 = vmatprep.subr.bf16.mxu0 %v5523_v58  ;;  %2978 = vmatprep.subr.bf16.mxu1 %v5526_v59  ;;  %v5613_v58 = vld [vmem:[#allocation2 + $0xb24] ss:$16 sps:$4 sm:$0xff]   ;;  %v5616_v59 = vld [vmem:[#allocation2 + $0xb2c] ss:$16 sps:$4 sm:$0xff]  }
 0x197   :  { %2692 = vmatpush1.bf16.msra.mxu0 %v5521_v60  ;;  %2979 = vmatpush1.bf16.msra.mxu1 %v5524_v61  ;;  %v5611_v60 = vld [vmem:[#allocation2 + $0xb20] ss:$16 sps:$4 sm:$0xff]   ;;  %v5614_v61 = vld [vmem:[#allocation2 + $0xb28] ss:$16 sps:$4 sm:$0xff]  }
 0x198   :  { %2693 = vmatprep.subr.bf16.mxu0 %v5529_v62  ;;  %2980 = vmatprep.subr.bf16.mxu1 %v5532_v63  ;;  %v5619_v62 = vld [vmem:[#allocation2 + $0xb44] ss:$16 sps:$4 sm:$0xff]   ;;  %v5622_v63 = vld [vmem:[#allocation2 + $0xb4c] ss:$16 sps:$4 sm:$0xff]  }
 0x19b   :  { %2694 = vmatpush1.bf16.msra.mxu0 %v5527_v0  ;;  %2981 = vmatpush1.bf16.msra.mxu1 %v5530_v1  ;;  %v5617_v0 = vld [vmem:[#allocation2 + $0xb40] ss:$16 sps:$4 sm:$0xff]   ;;  %v5620_v1 = vld [vmem:[#allocation2 + $0xb48] ss:$16 sps:$4 sm:$0xff]  }
 0x19c   :  { %2695 = vmatprep.subr.bf16.mxu0 %v5535_v2  ;;  %2982 = vmatprep.subr.bf16.mxu1 %v5538_v3  ;;  %v5625_v2 = vld [vmem:[#allocation2 + $0xb64] ss:$16 sps:$4 sm:$0xff]   ;;  %v5628_v3 = vld [vmem:[#allocation2 + $0xb6c] ss:$16 sps:$4 sm:$0xff]  }
 0x19f   :  { %2696 = vmatpush1.bf16.msra.mxu0 %v5533_v4  ;;  %2983 = vmatpush1.bf16.msra.mxu1 %v5536_v5  ;;  %v5623_v4 = vld [vmem:[#allocation2 + $0xb60] ss:$16 sps:$4 sm:$0xff]   ;;  %v5626_v5 = vld [vmem:[#allocation2 + $0xb68] ss:$16 sps:$4 sm:$0xff]  }
 0x1a0   :  { %2697 = vmatprep.subr.bf16.mxu0 %v5541_v6  ;;  %2984 = vmatprep.subr.bf16.mxu1 %v5544_v7  ;;  %v5631_v6 = vld [vmem:[#allocation2 + $0xb84] ss:$16 sps:$4 sm:$0xff]   ;;  %v5634_v7 = vld [vmem:[#allocation2 + $0xb8c] ss:$16 sps:$4 sm:$0xff]  }
 0x1a3   :  { %2698 = vmatpush1.bf16.msra.mxu0 %v5539_v8  ;;  %2985 = vmatpush1.bf16.msra.mxu1 %v5542_v9  ;;  %v5629_v8 = vld [vmem:[#allocation2 + $0xb80] ss:$16 sps:$4 sm:$0xff]   ;;  %v5632_v9 = vld [vmem:[#allocation2 + $0xb88] ss:$16 sps:$4 sm:$0xff]  }
 0x1a4   :  { %2699 = vmatprep.subr.bf16.mxu0 %v5547_v10  ;;  %2986 = vmatprep.subr.bf16.mxu1 %v5550_v11  ;;  %v5637_v10 = vld [vmem:[#allocation2 + $0xba4] ss:$16 sps:$4 sm:$0xff]   ;;  %v5640_v11 = vld [vmem:[#allocation2 + $0xbac] ss:$16 sps:$4 sm:$0xff]  }
 0x1a7   :  { %2700 = vmatpush1.bf16.msra.mxu0 %v5545_v12  ;;  %2987 = vmatpush1.bf16.msra.mxu1 %v5548_v13  ;;  %v5635_v12 = vld [vmem:[#allocation2 + $0xba0] ss:$16 sps:$4 sm:$0xff]   ;;  %v5638_v13 = vld [vmem:[#allocation2 + $0xba8] ss:$16 sps:$4 sm:$0xff]  }
 0x1a8   :  { %2701 = vmatprep.subr.bf16.mxu0 %v5553_v14  ;;  %2988 = vmatprep.subr.bf16.mxu1 %v5556_v15  ;;  %v5643_v14 = vld [vmem:[#allocation2 + $0xbc4] ss:$16 sps:$4 sm:$0xff]   ;;  %v5646_v15 = vld [vmem:[#allocation2 + $0xbcc] ss:$16 sps:$4 sm:$0xff]  }
 0x1ab   :  { %2702 = vmatpush1.bf16.msra.mxu0 %v5551_v16  ;;  %2989 = vmatpush1.bf16.msra.mxu1 %v5554_v17  ;;  %v5641_v16 = vld [vmem:[#allocation2 + $0xbc0] ss:$16 sps:$4 sm:$0xff]   ;;  %v5644_v17 = vld [vmem:[#allocation2 + $0xbc8] ss:$16 sps:$4 sm:$0xff]  }
 0x1ac   :  { %2712 = vmatprep.subr.bf16.mxu0 %v5559_v18  ;;  %2999 = vmatprep.subr.bf16.mxu1 %v5562_v20  ;;  %v5649_v18 = vld [vmem:[#allocation2 + $0xbe4] ss:$16 sps:$4 sm:$0xff]   ;;  %v5647_v20 = vld [vmem:[#allocation2 + $0xbe0] ss:$16 sps:$4 sm:$0xff]  }
 0x1ae   :  { %2704 = vmatmul.mubr.bf16.vlgmr.msra.gmra.mrb[0].mxu0 %v124_v22  ;;  %2991 = vmatmul.mubr.bf16.vlgmr.msra.gmra.mrb[0].mxu1 %v124_v22  ;;  %v113_v22 = vld [vmem:[%s6225_s0 + $0x50] sm:$0xff] }
 0x1af   :  { %2713 = vmatpush1.bf16.msra.mxu0 %v5557_v23  ;;  %3000 = vmatpush1.bf16.msra.mxu1 %v5560_v24  ;;  %v5655_v23 = vld [vmem:[#allocation2 + $0xc04] ss:$16 sps:$4 sm:$0xff]   ;;  %v5658_v24 = vld [vmem:[#allocation2 + $0xc0c] ss:$16 sps:$4 sm:$0xff]  }
 0x1b0   :  { %2714 = vmatprep.subr.bf16.mxu0 %v5565_v25  ;;  %3001 = vmatprep.subr.bf16.mxu1 %v5568_v26  ;;  %v126_v25 = vpack.c.bf16 %v113_v22, %v113_v22  ;;  %v5653_v26 = vld [vmem:[#allocation2 + $0xc00] ss:$16 sps:$4 sm:$0xff]   ;;  %v5740_v22 = vld [vmem:[#allocation6 + $0x188] ss:$16 sps:$4 sm:$0xff]  }
 0x1b1   :  { %2744 = vmatprep.mubr.bf16.mxu0 %v127_v29  ;;  %3031 = vmatprep.mubr.bf16.mxu1 %v127_v29  ;;  %v5664_v29 = vld [vmem:[#allocation2 + $0xc2c] ss:$16 sps:$4 sm:$0xff]  }
 0x1b3   :  { %2715 = vmatpush1.bf16.msra.mxu0 %v5563_v27  ;;  %3002 = vmatpush1.bf16.msra.mxu1 %v5566_v28  ;;  %v5656_v27 = vld [vmem:[#allocation2 + $0xc08] ss:$16 sps:$4 sm:$0xff]   ;;  %v5661_v28 = vld [vmem:[#allocation2 + $0xc24] ss:$16 sps:$4 sm:$0xff]  }
 0x1b4   :  { %2716 = vmatprep.subr.bf16.mxu0 %v5571_v30  ;;  %3003 = vmatprep.subr.bf16.mxu1 %v5574_v31  ;;  %v5659_v30 = vld [vmem:[#allocation2 + $0xc20] ss:$16 sps:$4 sm:$0xff]   ;;  %v5662_v31 = vld [vmem:[#allocation2 + $0xc28] ss:$16 sps:$4 sm:$0xff]  }
 0x1b7   :  { %2717 = vmatpush1.bf16.msra.mxu0 %v5569_v32  ;;  %3004 = vmatpush1.bf16.msra.mxu1 %v5572_v33  ;;  %v5667_v32 = vld [vmem:[#allocation6 + $0x4] ss:$16 sps:$4 sm:$0xff]   ;;  %v5670_v33 = vld [vmem:[#allocation6 + $0xc] ss:$16 sps:$4 sm:$0xff]  }
 0x1b8   :  { %2718 = vmatprep.subr.bf16.mxu0 %v5577_v34  ;;  %3005 = vmatprep.subr.bf16.mxu1 %v5580_v35  ;;  %v6039_v34 = vmov 0   ;;  %v115_v35 = vld [vmem:[%s6225_s0 + $0x60] sm:$0xff] }
 0x1bb   :  { %2719 = vmatpush1.bf16.msra.mxu0 %v5575_v36  ;;  %3006 = vmatpush1.bf16.msra.mxu1 %v5578_v37  ;;  %v128_v36 = vpack.c.bf16 %v115_v35, %v115_v35  ;;  %v5665_v37 = vld [vmem:[#allocation6] ss:$16 sps:$4 sm:$0xff]   ;;  %v5763_v35 = vld [vmem:[#allocation6 + $0x204] ss:$16 sps:$4 sm:$0xff]  }
 0x1bc   :  { %2720 = vmatprep.subr.bf16.mxu0 %v5583_v38  ;;  %3007 = vmatprep.subr.bf16.mxu1 %v5586_v39  ;;  %v5668_v38 = vld [vmem:[#allocation6 + $0x8] ss:$16 sps:$4 sm:$0xff]   ;;  %v5673_v39 = vld [vmem:[#allocation6 + $0x24] ss:$16 sps:$4 sm:$0xff]  }
 0x1bf   :  { %2721 = vmatpush1.bf16.msra.mxu0 %v5581_v40  ;;  %3008 = vmatpush1.bf16.msra.mxu1 %v5584_v41  ;;  %v5676_v40 = vld [vmem:[#allocation6 + $0x2c] ss:$16 sps:$4 sm:$0xff]   ;;  %v5671_v41 = vld [vmem:[#allocation6 + $0x20] ss:$16 sps:$4 sm:$0xff]  }
 0x1c0   :  { %2722 = vmatprep.subr.bf16.mxu0 %v5589_v42  ;;  %3009 = vmatprep.subr.bf16.mxu1 %v5592_v43  ;;  %v5674_v42 = vld [vmem:[#allocation6 + $0x28] ss:$16 sps:$4 sm:$0xff]   ;;  %v5679_v43 = vld [vmem:[#allocation6 + $0x44] ss:$16 sps:$4 sm:$0xff]  }
 0x1c3   :  { %2723 = vmatpush1.bf16.msra.mxu0 %v5587_v44  ;;  %3010 = vmatpush1.bf16.msra.mxu1 %v5590_v45  ;;  %v5682_v44 = vld [vmem:[#allocation6 + $0x4c] ss:$16 sps:$4 sm:$0xff]   ;;  %v5677_v45 = vld [vmem:[#allocation6 + $0x40] ss:$16 sps:$4 sm:$0xff]  }
 0x1c4   :  { %2724 = vmatprep.subr.bf16.mxu0 %v5595_v46  ;;  %3011 = vmatprep.subr.bf16.mxu1 %v5598_v47  ;;  %v5680_v46 = vld [vmem:[#allocation6 + $0x48] ss:$16 sps:$4 sm:$0xff]   ;;  %v5685_v47 = vld [vmem:[#allocation6 + $0x64] ss:$16 sps:$4 sm:$0xff]  }
 0x1c7   :  { %2725 = vmatpush1.bf16.msra.mxu0 %v5593_v48  ;;  %3012 = vmatpush1.bf16.msra.mxu1 %v5596_v49  ;;  %v5688_v48 = vld [vmem:[#allocation6 + $0x6c] ss:$16 sps:$4 sm:$0xff]   ;;  %v5683_v49 = vld [vmem:[#allocation6 + $0x60] ss:$16 sps:$4 sm:$0xff]  }
 0x1c8   :  { %2726 = vmatprep.subr.bf16.mxu0 %v5601_v50  ;;  %3013 = vmatprep.subr.bf16.mxu1 %v5604_v51  ;;  %v5686_v50 = vld [vmem:[#allocation6 + $0x68] ss:$16 sps:$4 sm:$0xff]   ;;  %v5691_v51 = vld [vmem:[#allocation6 + $0x84] ss:$16 sps:$4 sm:$0xff]  }
 0x1cb   :  { %2727 = vmatpush1.bf16.msra.mxu0 %v5599_v52  ;;  %3014 = vmatpush1.bf16.msra.mxu1 %v5602_v53  ;;  %v5694_v52 = vld [vmem:[#allocation6 + $0x8c] ss:$16 sps:$4 sm:$0xff]   ;;  %v5689_v53 = vld [vmem:[#allocation6 + $0x80] ss:$16 sps:$4 sm:$0xff]  }
 0x1cc   :  { %2728 = vmatprep.subr.bf16.mxu0 %v5607_v54  ;;  %3015 = vmatprep.subr.bf16.mxu1 %v5610_v55  ;;  %v5692_v54 = vld [vmem:[#allocation6 + $0x88] ss:$16 sps:$4 sm:$0xff]   ;;  %v5697_v55 = vld [vmem:[#allocation6 + $0xa4] ss:$16 sps:$4 sm:$0xff]  }
 0x1cf   :  { %2729 = vmatpush1.bf16.msra.mxu0 %v5605_v56  ;;  %3016 = vmatpush1.bf16.msra.mxu1 %v5608_v57  ;;  %v5700_v56 = vld [vmem:[#allocation6 + $0xac] ss:$16 sps:$4 sm:$0xff]   ;;  %v5695_v57 = vld [vmem:[#allocation6 + $0xa0] ss:$16 sps:$4 sm:$0xff]  }
 0x1d0   :  { %2730 = vmatprep.subr.bf16.mxu0 %v5613_v58  ;;  %3017 = vmatprep.subr.bf16.mxu1 %v5616_v59  ;;  %v5698_v58 = vld [vmem:[#allocation6 + $0xa8] ss:$16 sps:$4 sm:$0xff]   ;;  %v5703_v59 = vld [vmem:[#allocation6 + $0xc4] ss:$16 sps:$4 sm:$0xff]  }
 0x1d3   :  { %2731 = vmatpush1.bf16.msra.mxu0 %v5611_v60  ;;  %3018 = vmatpush1.bf16.msra.mxu1 %v5614_v61  ;;  %v5706_v60 = vld [vmem:[#allocation6 + $0xcc] ss:$16 sps:$4 sm:$0xff]   ;;  %v5701_v61 = vld [vmem:[#allocation6 + $0xc0] ss:$16 sps:$4 sm:$0xff]  }
 0x1d4   :  { %2732 = vmatprep.subr.bf16.mxu0 %v5619_v62  ;;  %3019 = vmatprep.subr.bf16.mxu1 %v5622_v63  ;;  %v5704_v62 = vld [vmem:[#allocation6 + $0xc8] ss:$16 sps:$4 sm:$0xff]   ;;  %v5709_v63 = vld [vmem:[#allocation6 + $0xe4] ss:$16 sps:$4 sm:$0xff]  }
 0x1d7   :  { %2733 = vmatpush1.bf16.msra.mxu0 %v5617_v0  ;;  %3020 = vmatpush1.bf16.msra.mxu1 %v5620_v1  ;;  %v5712_v0 = vld [vmem:[#allocation6 + $0xec] ss:$16 sps:$4 sm:$0xff]   ;;  %v5707_v1 = vld [vmem:[#allocation6 + $0xe0] ss:$16 sps:$4 sm:$0xff]  }
 0x1d8   :  { %2734 = vmatprep.subr.bf16.mxu0 %v5625_v2  ;;  %3021 = vmatprep.subr.bf16.mxu1 %v5628_v3  ;;  %v5710_v2 = vld [vmem:[#allocation6 + $0xe8] ss:$16 sps:$4 sm:$0xff]   ;;  %v5715_v3 = vld [vmem:[#allocation6 + $0x104] ss:$16 sps:$4 sm:$0xff]  }
 0x1db   :  { %2735 = vmatpush1.bf16.msra.mxu0 %v5623_v4  ;;  %3022 = vmatpush1.bf16.msra.mxu1 %v5626_v5  ;;  %v5718_v4 = vld [vmem:[#allocation6 + $0x10c] ss:$16 sps:$4 sm:$0xff]   ;;  %v5713_v5 = vld [vmem:[#allocation6 + $0x100] ss:$16 sps:$4 sm:$0xff]  }
 0x1dc   :  { %2736 = vmatprep.subr.bf16.mxu0 %v5631_v6  ;;  %3023 = vmatprep.subr.bf16.mxu1 %v5634_v7  ;;  %v5716_v6 = vld [vmem:[#allocation6 + $0x108] ss:$16 sps:$4 sm:$0xff]   ;;  %v5721_v7 = vld [vmem:[#allocation6 + $0x124] ss:$16 sps:$4 sm:$0xff]  }
 0x1df   :  { %2737 = vmatpush1.bf16.msra.mxu0 %v5629_v8  ;;  %3024 = vmatpush1.bf16.msra.mxu1 %v5632_v9  ;;  %v5724_v8 = vld [vmem:[#allocation6 + $0x12c] ss:$16 sps:$4 sm:$0xff]   ;;  %v5719_v9 = vld [vmem:[#allocation6 + $0x120] ss:$16 sps:$4 sm:$0xff]  }
 0x1e0   :  { %2738 = vmatprep.subr.bf16.mxu0 %v5637_v10  ;;  %3025 = vmatprep.subr.bf16.mxu1 %v5640_v11  ;;  %v5722_v10 = vld [vmem:[#allocation6 + $0x128] ss:$16 sps:$4 sm:$0xff]   ;;  %v5727_v11 = vld [vmem:[#allocation6 + $0x144] ss:$16 sps:$4 sm:$0xff]  }
 0x1e3   :  { %2739 = vmatpush1.bf16.msra.mxu0 %v5635_v12  ;;  %3026 = vmatpush1.bf16.msra.mxu1 %v5638_v13  ;;  %v5730_v12 = vld [vmem:[#allocation6 + $0x14c] ss:$16 sps:$4 sm:$0xff]   ;;  %v5725_v13 = vld [vmem:[#allocation6 + $0x140] ss:$16 sps:$4 sm:$0xff]  }
 0x1e4   :  { %2740 = vmatprep.subr.bf16.mxu0 %v5643_v14  ;;  %3027 = vmatprep.subr.bf16.mxu1 %v5646_v15  ;;  %v5728_v14 = vld [vmem:[#allocation6 + $0x148] ss:$16 sps:$4 sm:$0xff]   ;;  %v5733_v15 = vld [vmem:[#allocation6 + $0x164] ss:$16 sps:$4 sm:$0xff]  }
 0x1e7   :  { %2741 = vmatpush1.bf16.msra.mxu0 %v5641_v16  ;;  %3028 = vmatpush1.bf16.msra.mxu1 %v5644_v17  ;;  %v5736_v16 = vld [vmem:[#allocation6 + $0x16c] ss:$16 sps:$4 sm:$0xff]   ;;  %v5731_v17 = vld [vmem:[#allocation6 + $0x160] ss:$16 sps:$4 sm:$0xff]  }
 0x1e8   :  { %2742 = vmatprep.subr.bf16.mxu0 %v5649_v18  ;;  %3029 = vmatprep.subr.bf16.mxu1 %v5652_v19  ;;  %v5734_v18 = vld [vmem:[#allocation6 + $0x168] ss:$16 sps:$4 sm:$0xff]   ;;  %v5739_v19 = vld [vmem:[#allocation6 + $0x184] ss:$16 sps:$4 sm:$0xff]  }
 0x1eb   :  { %2743 = vmatpush1.bf16.msra.mxu0 %v5647_v20  ;;  %3030 = vmatpush1.bf16.msra.mxu1 %v5650_v21  ;;  %v5742_v20 = vld [vmem:[#allocation6 + $0x18c] ss:$16 sps:$4 sm:$0xff]   ;;  %v5737_v21 = vld [vmem:[#allocation6 + $0x180] ss:$16 sps:$4 sm:$0xff]  }
 0x1ec   :  { %2753 = vmatprep.subr.bf16.mxu0 %v5655_v23  ;;  %3040 = vmatprep.subr.bf16.mxu1 %v5658_v24  ;;  %v5745_v23 = vld [vmem:[#allocation6 + $0x1a4] ss:$16 sps:$4 sm:$0xff]   ;;  %v5748_v24 = vld [vmem:[#allocation6 + $0x1ac] ss:$16 sps:$4 sm:$0xff]  }
 0x1ee   :  { %2745 = vmatmul.mubr.bf16.vlgmr.msra.gmra.mrb[0].mxu0 %v126_v25  ;;  %3032 = vmatmul.mubr.bf16.vlgmr.msra.gmra.mrb[0].mxu1 %v126_v25  ;;  %v5743_v25 = vld [vmem:[#allocation6 + $0x1a0] ss:$16 sps:$4 sm:$0xff]  }
 0x1ef   :  { %2754 = vmatpush1.bf16.msra.mxu0 %v5653_v26  ;;  %3041 = vmatpush1.bf16.msra.mxu1 %v5656_v27  ;;  %v5746_v26 = vld [vmem:[#allocation6 + $0x1a8] ss:$16 sps:$4 sm:$0xff]   ;;  %v5751_v27 = vld [vmem:[#allocation6 + $0x1c4] ss:$16 sps:$4 sm:$0xff]  }
 0x1f0   :  { %2755 = vmatprep.subr.bf16.mxu0 %v5661_v28  ;;  %3042 = vmatprep.subr.bf16.mxu1 %v5664_v29  ;;  %v5754_v28 = vld [vmem:[#allocation6 + $0x1cc] ss:$16 sps:$4 sm:$0xff]   ;;  %v5749_v29 = vld [vmem:[#allocation6 + $0x1c0] ss:$16 sps:$4 sm:$0xff]  }
 0x1f1   :  { %2785 = vmatprep.mubr.bf16.mxu0 %v6039_v34  ;;  %3072 = vmatprep.mubr.bf16.mxu1 %v6039_v34  ;;  %v5758_v34 = vld [vmem:[#allocation6 + $0x1e8] ss:$16 sps:$4 sm:$0xff]  }
 0x1f3   :  { %2756 = vmatpush1.bf16.msra.mxu0 %v5659_v30  ;;  %3043 = vmatpush1.bf16.msra.mxu1 %v5662_v31  ;;  %v5752_v30 = vld [vmem:[#allocation6 + $0x1c8] ss:$16 sps:$4 sm:$0xff]   ;;  %v5757_v31 = vld [vmem:[#allocation6 + $0x1e4] ss:$16 sps:$4 sm:$0xff]  }
 0x1f4   :  { %3879 = vmatprep.subr.bf16.mxu0 %v5667_v32  ;;  %3961 = vmatprep.subr.bf16.mxu1 %v5670_v33  ;;  %v5760_v32 = vld [vmem:[#allocation6 + $0x1ec] ss:$16 sps:$4 sm:$0xff]   ;;  %v5755_v33 = vld [vmem:[#allocation6 + $0x1e0] ss:$16 sps:$4 sm:$0xff]  }
 0x1fa   :  { %4795 = vmatmul.mubr.msk.bf16.vlgmr.msra.gmra.mrb[0].mxu0 %vm2503_vm0, %v128_v36  ;;  %4796 = vmatmul.mubr.msk.bf16.vlgmr.msra.gmra.mrb[0].mxu1 %vm2503_vm0, %v128_v36  ;;  %v5766_v36 = vld [vmem:[#allocation6 + $0x20c] ss:$16 sps:$4 sm:$0xff]  }
 0x1fb   :  { %3880 = vmatpush1.bf16.msra.mxu0 %v5665_v37  ;;  %3962 = vmatpush1.bf16.msra.mxu1 %v5668_v38  ;;  %v523_v37 = vlaneseq }
 0x1fc   :  { %3881 = vmatprep.subr.bf16.mxu0 %v5673_v39  ;;  %3963 = vmatprep.subr.bf16.mxu1 %v5676_v40  ;;  %v6194_v40 = vld [vmem:[#allocation4] sm:$0xf] }
 0x1fd   :  { %v6191_v38 = vshrl.u32 %v523_v37, 7  ;;  %v5823_v37 = vld [vmem:[#allocation6 + $0x344] ss:$16 sps:$4 sm:$0xff]  }
 0x1ff   :  { %3882 = vmatpush1.bf16.msra.mxu0 %v5671_v41  ;;  %3964 = vmatpush1.bf16.msra.mxu1 %v5674_v42  ;;  %v525_v39 = vsub.s32 0, %v6191_v38  ;;  %v529_v41 = vsub.s32 1, %v6191_v38  ;;  %v537_v42 = vsub.s32 3, %v6191_v38 }
 0x200   :  { %3883 = vmatprep.subr.bf16.mxu0 %v5679_v43  ;;  %3965 = vmatprep.subr.bf16.mxu1 %v5682_v44 }
 0x201   :  { %v526_v43 = vrot.slane %v6194_v40, %v525_v39  ;;  %v530_v44 = vrot.slane %v6194_v40, %v529_v41 }
 0x203   :  { %3884 = vmatpush1.bf16.msra.mxu0 %v5677_v45  ;;  %3966 = vmatpush1.bf16.msra.mxu1 %v5680_v46  ;;  %v538_v45 = vrot.slane %v6194_v40, %v537_v42 }
 0x204   :  { %3885 = vmatprep.subr.bf16.mxu0 %v5685_v47  ;;  %3967 = vmatprep.subr.bf16.mxu1 %v5688_v48 }
 0x207   :  { %3886 = vmatpush1.bf16.msra.mxu0 %v5683_v49  ;;  %3968 = vmatpush1.bf16.msra.mxu1 %v5686_v50 }
 0x208   :  { %3887 = vmatprep.subr.bf16.mxu0 %v5691_v51  ;;  %3969 = vmatprep.subr.bf16.mxu1 %v5694_v52 }
 0x20b   :  { %3888 = vmatpush1.bf16.msra.mxu0 %v5689_v53  ;;  %3970 = vmatpush1.bf16.msra.mxu1 %v5692_v54 }
 0x20c   :  { %3889 = vmatprep.subr.bf16.mxu0 %v5697_v55  ;;  %3971 = vmatprep.subr.bf16.mxu1 %v5700_v56 }
 0x20f   :  { %3890 = vmatpush1.bf16.msra.mxu0 %v5695_v57  ;;  %3972 = vmatpush1.bf16.msra.mxu1 %v5698_v58 }
 0x210   :  { %3891 = vmatprep.subr.bf16.mxu0 %v5703_v59  ;;  %3973 = vmatprep.subr.bf16.mxu1 %v5706_v60 }
 0x213   :  { %3892 = vmatpush1.bf16.msra.mxu0 %v5701_v61  ;;  %3974 = vmatpush1.bf16.msra.mxu1 %v5704_v62  ;;  %v5761_v61 = vld [vmem:[#allocation6 + $0x200] ss:$16 sps:$4 sm:$0xff]   ;;  %v5764_v62 = vld [vmem:[#allocation6 + $0x208] ss:$16 sps:$4 sm:$0xff]  }
 0x214   :  { %3893 = vmatprep.subr.bf16.mxu0 %v5709_v63  ;;  %3975 = vmatprep.subr.bf16.mxu1 %v5712_v0  ;;  %v5769_v0 = vld [vmem:[#allocation6 + $0x224] ss:$16 sps:$4 sm:$0xff]  }
 0x217   :  { %3894 = vmatpush1.bf16.msra.mxu0 %v5707_v1  ;;  %3976 = vmatpush1.bf16.msra.mxu1 %v5710_v2  ;;  %v5772_v1 = vld [vmem:[#allocation6 + $0x22c] ss:$16 sps:$4 sm:$0xff]  }
 0x218   :  { %3895 = vmatprep.subr.bf16.mxu0 %v5715_v3  ;;  %3977 = vmatprep.subr.bf16.mxu1 %v5718_v4  ;;  %v5767_v3 = vld [vmem:[#allocation6 + $0x220] ss:$16 sps:$4 sm:$0xff]   ;;  %v5770_v4 = vld [vmem:[#allocation6 + $0x228] ss:$16 sps:$4 sm:$0xff]  }
 0x21b   :  { %3896 = vmatpush1.bf16.msra.mxu0 %v5713_v5  ;;  %3978 = vmatpush1.bf16.msra.mxu1 %v5716_v6  ;;  %v5775_v5 = vld [vmem:[#allocation6 + $0x244] ss:$16 sps:$4 sm:$0xff]   ;;  %v5778_v6 = vld [vmem:[#allocation6 + $0x24c] ss:$16 sps:$4 sm:$0xff]  }
 0x21c   :  { %3897 = vmatprep.subr.bf16.mxu0 %v5721_v7  ;;  %3979 = vmatprep.subr.bf16.mxu1 %v5724_v8  ;;  %v5773_v7 = vld [vmem:[#allocation6 + $0x240] ss:$16 sps:$4 sm:$0xff]   ;;  %v5776_v8 = vld [vmem:[#allocation6 + $0x248] ss:$16 sps:$4 sm:$0xff]  }
 0x21f   :  { %3898 = vmatpush1.bf16.msra.mxu0 %v5719_v9  ;;  %3980 = vmatpush1.bf16.msra.mxu1 %v5722_v10  ;;  %v5781_v9 = vld [vmem:[#allocation6 + $0x264] ss:$16 sps:$4 sm:$0xff]   ;;  %v5784_v10 = vld [vmem:[#allocation6 + $0x26c] ss:$16 sps:$4 sm:$0xff]  }
 0x220   :  { %3899 = vmatprep.subr.bf16.mxu0 %v5727_v11  ;;  %3981 = vmatprep.subr.bf16.mxu1 %v5730_v12  ;;  %v5779_v11 = vld [vmem:[#allocation6 + $0x260] ss:$16 sps:$4 sm:$0xff]   ;;  %v5782_v12 = vld [vmem:[#allocation6 + $0x268] ss:$16 sps:$4 sm:$0xff]  }
 0x223   :  { %3900 = vmatpush1.bf16.msra.mxu0 %v5725_v13  ;;  %3982 = vmatpush1.bf16.msra.mxu1 %v5728_v14  ;;  %v5787_v13 = vld [vmem:[#allocation6 + $0x284] ss:$16 sps:$4 sm:$0xff]   ;;  %v5790_v14 = vld [vmem:[#allocation6 + $0x28c] ss:$16 sps:$4 sm:$0xff]  }
 0x224   :  { %3901 = vmatprep.subr.bf16.mxu0 %v5733_v15  ;;  %3983 = vmatprep.subr.bf16.mxu1 %v5736_v16  ;;  %v5785_v15 = vld [vmem:[#allocation6 + $0x280] ss:$16 sps:$4 sm:$0xff]   ;;  %v5788_v16 = vld [vmem:[#allocation6 + $0x288] ss:$16 sps:$4 sm:$0xff]  }
 0x227   :  { %3902 = vmatpush1.bf16.msra.mxu0 %v5731_v17  ;;  %3984 = vmatpush1.bf16.msra.mxu1 %v5734_v18  ;;  %v5793_v17 = vld [vmem:[#allocation6 + $0x2a4] ss:$16 sps:$4 sm:$0xff]   ;;  %v5796_v18 = vld [vmem:[#allocation6 + $0x2ac] ss:$16 sps:$4 sm:$0xff]  }
 0x228   :  { %3903 = vmatprep.subr.bf16.mxu0 %v5739_v19  ;;  %3985 = vmatprep.subr.bf16.mxu1 %v5742_v20  ;;  %v5791_v19 = vld [vmem:[#allocation6 + $0x2a0] ss:$16 sps:$4 sm:$0xff]   ;;  %v5794_v20 = vld [vmem:[#allocation6 + $0x2a8] ss:$16 sps:$4 sm:$0xff]  }
 0x22b   :  { %3904 = vmatpush1.bf16.msra.mxu0 %v5737_v21  ;;  %3986 = vmatpush1.bf16.msra.mxu1 %v5740_v22  ;;  %v5799_v21 = vld [vmem:[#allocation6 + $0x2c4] ss:$16 sps:$4 sm:$0xff]   ;;  %v5802_v22 = vld [vmem:[#allocation6 + $0x2cc] ss:$16 sps:$4 sm:$0xff]  }
 0x22c   :  { %3905 = vmatprep.subr.bf16.mxu0 %v5745_v23  ;;  %3987 = vmatprep.subr.bf16.mxu1 %v5748_v24  ;;  %v5797_v23 = vld [vmem:[#allocation6 + $0x2c0] ss:$16 sps:$4 sm:$0xff]   ;;  %v5800_v24 = vld [vmem:[#allocation6 + $0x2c8] ss:$16 sps:$4 sm:$0xff]  }
 0x22f   :  { %3906 = vmatpush1.bf16.msra.mxu0 %v5743_v25  ;;  %3988 = vmatpush1.bf16.msra.mxu1 %v5746_v26  ;;  %v5805_v25 = vld [vmem:[#allocation6 + $0x2e4] ss:$16 sps:$4 sm:$0xff]   ;;  %v5808_v26 = vld [vmem:[#allocation6 + $0x2ec] ss:$16 sps:$4 sm:$0xff]  }
 0x230   :  { %3907 = vmatprep.subr.bf16.mxu0 %v5751_v27  ;;  %3989 = vmatprep.subr.bf16.mxu1 %v5754_v28  ;;  %v5803_v27 = vld [vmem:[#allocation6 + $0x2e0] ss:$16 sps:$4 sm:$0xff]   ;;  %v5806_v28 = vld [vmem:[#allocation6 + $0x2e8] ss:$16 sps:$4 sm:$0xff]  }
 0x233   :  { %3908 = vmatpush1.bf16.msra.mxu0 %v5749_v29  ;;  %3990 = vmatpush1.bf16.msra.mxu1 %v5752_v30  ;;  %v5811_v29 = vld [vmem:[#allocation6 + $0x304] ss:$16 sps:$4 sm:$0xff]   ;;  %v5814_v30 = vld [vmem:[#allocation6 + $0x30c] ss:$16 sps:$4 sm:$0xff]  }
 0x234   :  { %3909 = vmatprep.subr.bf16.mxu0 %v5757_v31  ;;  %3991 = vmatprep.subr.bf16.mxu1 %v5760_v32  ;;  %v5809_v31 = vld [vmem:[#allocation6 + $0x300] ss:$16 sps:$4 sm:$0xff]   ;;  %v5812_v32 = vld [vmem:[#allocation6 + $0x308] ss:$16 sps:$4 sm:$0xff]  }
 0x237   :  { %3910 = vmatpush1.bf16.msra.mxu0 %v5755_v33  ;;  %3992 = vmatpush1.bf16.msra.mxu1 %v5758_v34  ;;  %v5817_v33 = vld [vmem:[#allocation6 + $0x324] ss:$16 sps:$4 sm:$0xff]   ;;  %v5820_v34 = vld [vmem:[#allocation6 + $0x32c] ss:$16 sps:$4 sm:$0xff]  }
 0x238   :  { %3920 = vmatprep.subr.bf16.mxu0 %v5763_v35  ;;  %4002 = vmatprep.subr.bf16.mxu1 %v5766_v36  ;;  %v5815_v35 = vld [vmem:[#allocation6 + $0x320] ss:$16 sps:$4 sm:$0xff]   ;;  %v5818_v36 = vld [vmem:[#allocation6 + $0x328] ss:$16 sps:$4 sm:$0xff]  }
 0x2cd   :  { %v2787_v46 = vpop.f32.mrb[0].mxu0  ;;  %v6207_v47 = vpop.f32.mrb[0].mxu1 }
 0x2ce   :  { %v5002_v48 = vadd.f32 %v2787_v46, %v526_v43  ;;  %v2789_v49 = vpop.f32.mrb[1].mxu0  ;;  %v3076_v50 = vpop.f32.mrb[1].mxu1  ;;  %v5826_v43 = vld [vmem:[#allocation6 + $0x34c] ss:$16 sps:$4 sm:$0xff]   ;;  %v5829_v46 = vld [vmem:[#allocation6 + $0x364] ss:$16 sps:$4 sm:$0xff]  }
 0x2cf   :  { %v5003_v51 = vadd.f32 %v2789_v49, %v530_v44  ;;  %v5005_v52 = vadd.f32 %v3076_v50, %v538_v45  ;;  %v2791_v53 = vpop.f32.mrb[2].mxu0  ;;  %v3078_v54 = vpop.f32.mrb[2].mxu1  ;;  %v5821_v44 = vld [vmem:[#allocation6 + $0x340] ss:$16 sps:$4 sm:$0xff]   ;;  %v5824_v45 = vld [vmem:[#allocation6 + $0x348] ss:$16 sps:$4 sm:$0xff]  }
 0x2d0   :  { %v3081_v55 = vmax.f32 %v5002_v48, 0.0  ;;  %v2792_v56 = vpop.f32.mrb[3].mxu0  ;;  %v3079_v57 = vpop.f32.mrb[3].mxu1  ;;  %v5832_v48 = vld [vmem:[#allocation6 + $0x36c] ss:$16 sps:$4 sm:$0xff]  }
 0x2d1   :  { %v3082_v58 = vmax.f32 %v5003_v51, 0.0  ;;  %v3084_v59 = vmax.f32 %v5005_v52, 0.0  ;;  %v5827_v49 = vld [vmem:[#allocation6 + $0x360] ss:$16 sps:$4 sm:$0xff]   ;;  %v5830_v50 = vld [vmem:[#allocation6 + $0x368] ss:$16 sps:$4 sm:$0xff]  }
 0x2d2   :  { %v3085_v63 = vpack.c.bf16 %v3081_v55, %v3081_v55  ;;  %v5835_v51 = vld [vmem:[#allocation6 + $0x384] ss:$16 sps:$4 sm:$0xff]   ;;  %v5838_v52 = vld [vmem:[#allocation6 + $0x38c] ss:$16 sps:$4 sm:$0xff]   ;;  %v5833_v53 = vld [vmem:[#allocation6 + $0x380] ss:$16 sps:$4 sm:$0xff]  }
 0x2d3   :  { %v3086_v60 = vpack.c.bf16 %v3082_v58, %v3082_v58  ;;  %v3088_v2 = vpack.c.bf16 %v3084_v59, %v3084_v59  ;;  %v5836_v54 = vld [vmem:[#allocation6 + $0x388] ss:$16 sps:$4 sm:$0xff]   ;;  %v533_v55 = vsub.s32 2, %v6191_v38  ;;  %v5841_v56 = vld [vmem:[#allocation6 + $0x3a4] ss:$16 sps:$4 sm:$0xff]  }
 0x2d4   :  { %v5844_v57 = vld [vmem:[#allocation6 + $0x3ac] ss:$16 sps:$4 sm:$0xff]   ;;  %v5839_v58 = vld [vmem:[#allocation6 + $0x3a0] ss:$16 sps:$4 sm:$0xff]   ;;  %v5842_v59 = vld [vmem:[#allocation6 + $0x3a8] ss:$16 sps:$4 sm:$0xff]  }
 0x2d5   :  { %3911 = vmatprep.mubr.bf16.mxu0 %v3086_v60  ;;  %3993 = vmatprep.mubr.bf16.mxu1 %v3086_v60  ;;  %v534_v60 = vrot.slane %v6194_v40, %v533_v55  ;;  %v5857_v40 = vld [vmem:[#allocation9 + $0x40] sm:$0xff]  }
 0x2d6   :  { %3912 = vmatmul.mubr.bf16.vlgmr.msra.gmra.mrb[4].mxu0 %v3085_v63  ;;  %3994 = vmatmul.mubr.bf16.vlgmr.msra.gmra.mrb[4].mxu1 %v3085_v63  ;;  %v5845_v63 = vld [vmem:[#allocation6 + $0x3c0] ss:$16 sps:$4 sm:$0xff]  }
 0x2d7   :  { %3921 = vmatpush1.bf16.msra.mxu0 %v5761_v61  ;;  %4003 = vmatpush1.bf16.msra.mxu1 %v5764_v62  ;;  %v5847_v61 = vld [vmem:[#allocation6 + $0x3c4] ss:$16 sps:$4 sm:$0xff]   ;;  %v5850_v62 = vld [vmem:[#allocation6 + $0x3cc] ss:$16 sps:$4 sm:$0xff]  }
 0x2d8   :  { %3952 = vmatprep.mubr.bf16.mxu0 %v3088_v2  ;;  %4034 = vmatprep.mubr.bf16.mxu1 %v3088_v2  ;;  %v5853_v2 = vld [vmem:[#allocation6 + $0x3e4] ss:$16 sps:$4 sm:$0xff]  }
 0x2d9   :  { %3922 = vmatprep.subr.bf16.mxu0 %v5769_v0  ;;  %4004 = vmatprep.subr.bf16.mxu1 %v5772_v1  ;;  %v5848_v0 = vld [vmem:[#allocation6 + $0x3c8] ss:$16 sps:$4 sm:$0xff]   ;;  %v5004_v1 = vadd.f32 %v6207_v47, %v534_v60  ;;  %v5861_v47 = vld [vmem:[#allocation9 + $0x48] sm:$0xff]  }
 0x2db   :  { %3923 = vmatpush1.bf16.msra.mxu0 %v5767_v3  ;;  %4005 = vmatpush1.bf16.msra.mxu1 %v5770_v4  ;;  %v5856_v3 = vld [vmem:[#allocation6 + $0x3ec] ss:$16 sps:$4 sm:$0xff]   ;;  %v5851_v4 = vld [vmem:[#allocation6 + $0x3e0] ss:$16 sps:$4 sm:$0xff]  }
 0x2dc   :  { %3924 = vmatprep.subr.bf16.mxu0 %v5775_v5  ;;  %4006 = vmatprep.subr.bf16.mxu1 %v5778_v6  ;;  %v5854_v5 = vld [vmem:[#allocation6 + $0x3e8] ss:$16 sps:$4 sm:$0xff]   ;;  %v3083_v6 = vmax.f32 %v5004_v1, 0.0 }
 0x2df   :  { %3925 = vmatpush1.bf16.msra.mxu0 %v5773_v7  ;;  %4007 = vmatpush1.bf16.msra.mxu1 %v5776_v8  ;;  %v5858_v7 = vld [vmem:[#allocation9 + $0xc0] sm:$0xff]  }
 0x2e0   :  { %3926 = vmatprep.subr.bf16.mxu0 %v5781_v9  ;;  %4008 = vmatprep.subr.bf16.mxu1 %v5784_v10  ;;  %v5859_v8 = vld [vmem:[#allocation9] sm:$0xff]   ;;  %v3087_v10 = vpack.c.bf16 %v3083_v6, %v3083_v6 }
 0x2e1   :  { %v5860_v9 = vld [vmem:[#allocation9 + $0x80] sm:$0xff]  }
 0x2e3   :  { %3927 = vmatpush1.bf16.msra.mxu0 %v5779_v11  ;;  %4009 = vmatpush1.bf16.msra.mxu1 %v5782_v12  ;;  %v5862_v11 = vld [vmem:[#allocation9 + $0xc8] sm:$0xff]  }
 0x2e4   :  { %3928 = vmatprep.subr.bf16.mxu0 %v5787_v13  ;;  %4010 = vmatprep.subr.bf16.mxu1 %v5790_v14  ;;  %v5863_v12 = vld [vmem:[#allocation9 + $0x8] sm:$0xff]   ;;  %v5865_v14 = vld [vmem:[#allocation9 + $0x50] sm:$0xff]  }
 0x2e5   :  { %v5864_v13 = vld [vmem:[#allocation9 + $0x88] sm:$0xff]  }
 0x2e7   :  { %3929 = vmatpush1.bf16.msra.mxu0 %v5785_v15  ;;  %4011 = vmatpush1.bf16.msra.mxu1 %v5788_v16  ;;  %v5866_v15 = vld [vmem:[#allocation9 + $0xd0] sm:$0xff]  }
 0x2e8   :  { %3930 = vmatprep.subr.bf16.mxu0 %v5793_v17  ;;  %4012 = vmatprep.subr.bf16.mxu1 %v5796_v18  ;;  %v5867_v16 = vld [vmem:[#allocation9 + $0x10] sm:$0xff]   ;;  %v5869_v18 = vld [vmem:[#allocation9 + $0x58] sm:$0xff]  }
 0x2e9   :  { %v5868_v17 = vld [vmem:[#allocation9 + $0x90] sm:$0xff]  }
 0x2eb   :  { %3931 = vmatpush1.bf16.msra.mxu0 %v5791_v19  ;;  %4013 = vmatpush1.bf16.msra.mxu1 %v5794_v20  ;;  %v5870_v19 = vld [vmem:[#allocation9 + $0xd8] sm:$0xff]  }
 0x2ec   :  { %3932 = vmatprep.subr.bf16.mxu0 %v5799_v21  ;;  %4014 = vmatprep.subr.bf16.mxu1 %v5802_v22  ;;  %v5871_v20 = vld [vmem:[#allocation9 + $0x18] sm:$0xff]   ;;  %v5873_v22 = vld [vmem:[#allocation9 + $0x60] sm:$0xff]  }
 0x2ed   :  { %v5872_v21 = vld [vmem:[#allocation9 + $0x98] sm:$0xff]  }
 0x2ef   :  { %3933 = vmatpush1.bf16.msra.mxu0 %v5797_v23  ;;  %4015 = vmatpush1.bf16.msra.mxu1 %v5800_v24  ;;  %v5874_v23 = vld [vmem:[#allocation9 + $0xe0] sm:$0xff]  }
 0x2f0   :  { %3934 = vmatprep.subr.bf16.mxu0 %v5805_v25  ;;  %4016 = vmatprep.subr.bf16.mxu1 %v5808_v26  ;;  %v5875_v24 = vld [vmem:[#allocation9 + $0x20] sm:$0xff]   ;;  %v5877_v26 = vld [vmem:[#allocation9 + $0x68] sm:$0xff]  }
 0x2f1   :  { %v5876_v25 = vld [vmem:[#allocation9 + $0xa0] sm:$0xff]  }
 0x2f3   :  { %3935 = vmatpush1.bf16.msra.mxu0 %v5803_v27  ;;  %4017 = vmatpush1.bf16.msra.mxu1 %v5806_v28  ;;  %v5878_v27 = vld [vmem:[#allocation9 + $0xe8] sm:$0xff]  }
 0x2f4   :  { %3936 = vmatprep.subr.bf16.mxu0 %v5811_v29  ;;  %4018 = vmatprep.subr.bf16.mxu1 %v5814_v30  ;;  %v5879_v28 = vld [vmem:[#allocation9 + $0x28] sm:$0xff]   ;;  %v5881_v30 = vld [vmem:[#allocation9 + $0x70] sm:$0xff]  }
 0x2f5   :  { %v5880_v29 = vld [vmem:[#allocation9 + $0xa8] sm:$0xff]  }
 0x2f7   :  { %3937 = vmatpush1.bf16.msra.mxu0 %v5809_v31  ;;  %4019 = vmatpush1.bf16.msra.mxu1 %v5812_v32  ;;  %v5882_v31 = vld [vmem:[#allocation9 + $0xf0] sm:$0xff]  }
 0x2f8   :  { %3938 = vmatprep.subr.bf16.mxu0 %v5817_v33  ;;  %4020 = vmatprep.subr.bf16.mxu1 %v5820_v34  ;;  %v5883_v32 = vld [vmem:[#allocation9 + $0x30] sm:$0xff]   ;;  %v5885_v34 = vld [vmem:[#allocation9 + $0x78] sm:$0xff]  }
 0x2f9   :  { %v5884_v33 = vld [vmem:[#allocation9 + $0xb0] sm:$0xff]  }
 0x2fb   :  { %3939 = vmatpush1.bf16.msra.mxu0 %v5815_v35  ;;  %4021 = vmatpush1.bf16.msra.mxu1 %v5818_v36  ;;  %v5886_v35 = vld [vmem:[#allocation9 + $0xf8] sm:$0xff]  }
 0x2fc   :  { %3940 = vmatprep.subr.bf16.mxu0 %v5823_v37  ;;  %4022 = vmatprep.subr.bf16.mxu1 %v5826_v43  ;;  %v5887_v36 = vld [vmem:[#allocation9 + $0x38] sm:$0xff]  }
 0x2fd   :  { %v5888_v37 = vld [vmem:[#allocation9 + $0xb8] sm:$0xff]  }
 0x2fe   :  { %v3217_v43 = vld [vmem:[#allocation7] sm:$0xf] }
 0x2ff   :  { %3941 = vmatpush1.bf16.msra.mxu0 %v5821_v44  ;;  %4023 = vmatpush1.bf16.msra.mxu1 %v5824_v45  ;;  %v3222_v44 = vrot.slane %v3217_v43, %v525_v39  ;;  %v3230_v45 = vrot.slane %v3217_v43, %v533_v55 }
 0x300   :  { %3942 = vmatprep.subr.bf16.mxu0 %v5829_v46  ;;  %4024 = vmatprep.subr.bf16.mxu1 %v5832_v48  ;;  %v3226_v46 = vrot.slane %v3217_v43, %v529_v41  ;;  %v3234_v48 = vrot.slane %v3217_v43, %v537_v42 }
 0x303   :  { %3943 = vmatpush1.bf16.msra.mxu0 %v5827_v49  ;;  %4025 = vmatpush1.bf16.msra.mxu1 %v5830_v50 }
 0x304   :  { %3944 = vmatprep.subr.bf16.mxu0 %v5835_v51  ;;  %4026 = vmatprep.subr.bf16.mxu1 %v5838_v52 }
 0x307   :  { %3945 = vmatpush1.bf16.msra.mxu0 %v5833_v53  ;;  %4027 = vmatpush1.bf16.msra.mxu1 %v5836_v54 }
 0x308   :  { %3946 = vmatprep.subr.bf16.mxu0 %v5841_v56  ;;  %4028 = vmatprep.subr.bf16.mxu1 %v5844_v57 }
 0x30b   :  { %3947 = vmatpush1.bf16.msra.mxu0 %v5839_v58  ;;  %4029 = vmatpush1.bf16.msra.mxu1 %v5842_v59 }
 0x30c   :  { %3948 = vmatprep.subr.bf16.mxu0 %v5847_v61  ;;  %4030 = vmatprep.subr.bf16.mxu1 %v5850_v62 }
 0x30f   :  { %3949 = vmatpush1.bf16.msra.mxu0 %v5845_v63  ;;  %4031 = vmatpush1.bf16.msra.mxu1 %v5848_v0 }
 0x310   :  { %3950 = vmatprep.subr.bf16.mxu0 %v5853_v2  ;;  %4032 = vmatprep.subr.bf16.mxu1 %v5856_v3  ;;  %v4925_v3 = vld [vmem:[#allocation10] ss:$0 sm:$0xff] }
 0x313   :  { %3951 = vmatpush1.bf16.msra.mxu0 %v5851_v4  ;;  %4033 = vmatpush1.bf16.msra.mxu1 %v5854_v5 }
 0x314   :  { %4958 = vmatprep.subr.bf16.mxu0 %v5857_v40  ;;  %4980 = vmatprep.subr.bf16.mxu1 %v5858_v7 }
 0x316   :  { %3953 = vmatmul.mubr.bf16.vlgmr.msra.gmra.mrb[4].mxu0 %v3087_v10  ;;  %4035 = vmatmul.mubr.bf16.vlgmr.msra.gmra.mrb[4].mxu1 %v3087_v10 }
 0x317   :  { %4959 = vmatpush3.bf16.msra.mxu0 %v5859_v8  ;;  %4981 = vmatpush3.bf16.msra.mxu1 %v5860_v9 }
 0x318   :  { %4960 = vmatprep.subr.bf16.mxu0 %v5861_v47  ;;  %4982 = vmatprep.subr.bf16.mxu1 %v5862_v11 }
 0x31b   :  { %4961 = vmatpush3.bf16.msra.mxu0 %v5863_v12  ;;  %4983 = vmatpush3.bf16.msra.mxu1 %v5864_v13 }
 0x31c   :  { %4962 = vmatprep.subr.bf16.mxu0 %v5865_v14  ;;  %4984 = vmatprep.subr.bf16.mxu1 %v5866_v15 }
 0x31f   :  { %4963 = vmatpush3.bf16.msra.mxu0 %v5867_v16  ;;  %4985 = vmatpush3.bf16.msra.mxu1 %v5868_v17 }
 0x320   :  { %4964 = vmatprep.subr.bf16.mxu0 %v5869_v18  ;;  %4986 = vmatprep.subr.bf16.mxu1 %v5870_v19 }
 0x323   :  { %4965 = vmatpush3.bf16.msra.mxu0 %v5871_v20  ;;  %4987 = vmatpush3.bf16.msra.mxu1 %v5872_v21 }
 0x324   :  { %4966 = vmatprep.subr.bf16.mxu0 %v5873_v22  ;;  %4988 = vmatprep.subr.bf16.mxu1 %v5874_v23 }
 0x327   :  { %4967 = vmatpush3.bf16.msra.mxu0 %v5875_v24  ;;  %4989 = vmatpush3.bf16.msra.mxu1 %v5876_v25 }
 0x328   :  { %4968 = vmatprep.subr.bf16.mxu0 %v5877_v26  ;;  %4990 = vmatprep.subr.bf16.mxu1 %v5878_v27 }
 0x32b   :  { %4969 = vmatpush3.bf16.msra.mxu0 %v5879_v28  ;;  %4991 = vmatpush3.bf16.msra.mxu1 %v5880_v29 }
 0x32c   :  { %4970 = vmatprep.subr.bf16.mxu0 %v5881_v30  ;;  %4992 = vmatprep.subr.bf16.mxu1 %v5882_v31 }
 0x32f   :  { %4971 = vmatpush3.bf16.msra.mxu0 %v5883_v32  ;;  %4993 = vmatpush3.bf16.msra.mxu1 %v5884_v33 }
 0x330   :  { %4972 = vmatprep.subr.bf16.mxu0 %v5885_v34  ;;  %4994 = vmatprep.subr.bf16.mxu1 %v5886_v35 }
 0x333   :  { %4973 = vmatpush3.bf16.msra.mxu0 %v5887_v36  ;;  %4995 = vmatpush3.bf16.msra.mxu1 %v5888_v37 }
 0x3e9   :  { %v3954_v49 = vpop.f32.mrb[4].mxu0  ;;  %v4036_v50 = vpop.f32.mrb[4].mxu1 }
 0x3ea   :  { %v5006_v51 = vadd.f32 %v3954_v49, %v3222_v44  ;;  %v5008_v52 = vadd.f32 %v4036_v50, %v3230_v45  ;;  %v3956_v53 = vpop.f32.mrb[5].mxu0  ;;  %v4038_v54 = vpop.f32.mrb[5].mxu1 }
 0x3eb   :  { %v5007_v56 = vadd.f32 %v3956_v53, %v3226_v46  ;;  %v5009_v57 = vadd.f32 %v4038_v54, %v3234_v48  ;;  %v3958_v58 = vpop.f32.mrb[6].mxu0  ;;  %v4040_v59 = vpop.f32.mrb[6].mxu1 }
 0x3ec   :  { %v4043_v39 = vmax.f32 %v5006_v51, 0.0  ;;  %v4045_v60 = vmax.f32 %v5008_v52, 0.0  ;;  %v3959_v61 = vpop.f32.mrb[7].mxu0  ;;  %v4041_v55 = vpop.f32.mrb[7].mxu1 }
 0x3ed   :  { %v4044_v62 = vmax.f32 %v5007_v56, 0.0  ;;  %v4046_v63 = vmax.f32 %v5009_v57, 0.0 }
 0x3ee   :  { %v4047_v38 = vpack.c.bf16 %v4043_v39, %v4043_v39  ;;  %v4049_v42 = vpack.c.bf16 %v4045_v60, %v4045_v60 }
 0x3ef   :  { %v4048_v41 = vpack.c.bf16 %v4044_v62, %v4044_v62  ;;  %v4050_v0 = vpack.c.bf16 %v4046_v63, %v4046_v63 }
 0x3f1   :  { %4346 = vmatprep.mubr.bf16.mxu0 %v4048_v41  ;;  %4386 = vmatprep.mubr.bf16.mxu1 %v4050_v0 }
 0x3f2   :  { %4347 = vmatmul.mubr.bf16.vlgmr.msra.gmra.mrb[8].mxu0 %v4047_v38  ;;  %4387 = vmatmul.mubr.bf16.vlgmr.msra.gmra.mrb[8].mxu1 %v4049_v42 }
 0x4c5   :  { %v4974_v1 = vpop.f32.mrb[8].mxu0  ;;  %v4996_v2 = vpop.f32.mrb[8].mxu1 }
 0x4c6   :  { %v4975_v4 = vpop.f32.mrb[9].mxu0  ;;  %v4997_v5 = vpop.f32.mrb[9].mxu1 }
 0x4c7   :  { %v4976_v6 = vadd.f32 %v4975_v4, %v4974_v1  ;;  %v4998_v40 = vadd.f32 %v4997_v5, %v4996_v2  ;;  %v4977_v7 = vpop.f32.mrb[10].mxu0  ;;  %v4999_v8 = vpop.f32.mrb[10].mxu1 }
 0x4c8   :  { %v4978_v9 = vpop.f32.mrb[11].mxu0  ;;  %v5000_v10 = vpop.f32.mrb[11].mxu1 }
 0x4c9   :  { %v4349_v47 = vadd.f32 %v4976_v6, %v4925_v3 }
 0x4cb   :  { %v4389_v11 = vadd.f32 %v4998_v40, %v4349_v47 }
 0x4cd   :  { %4394 = vst [vmem:[%s6232_s7] sm:$0xff] %v4389_v11 }
 0x4ce   :  { %4399 = vsyncpa [#allocation3], 1 }
 0x4cf   :  { %4400 = vsyncpa [#allocation5], 1 }
 0x4d0   :  { %4401 = vsyncpa [#allocation8], 1 }
 0x4d1   :  { %4402 = vsyncpa [#allocation11], 1 }

</bundles_post_ra>
